<compile_context>
chip_gen: v7x
topology: tpu7x:2x2x1
jax: 0.10.0
libtpu: 0.0.40
codegen_flags: <defaults>
</compile_context>

<pallas_src>
import functools
import math

import jax
import jax.numpy as jnp
from jax.experimental import pallas as pl
from jax.experimental.pallas import tpu as pltpu

EPS = 1e-6
NEG_INF = -1e18


def _layernorm(x, g, b):
    # onmt-style LayerNorm: a_2 * (x - mean) / (std + eps) + b_2, unbiased std (N-1).
    mean = jnp.mean(x, axis=-1, keepdims=True)
    d = x - mean
    var = jnp.sum(d * d, axis=-1, keepdims=True) / (x.shape[-1] - 1)
    return g * d / (jnp.sqrt(var) + EPS) + b


def _layer_kernel(x_ref, kv_ref, amask_ref,
                  ln1g_ref, ln1b_ref,
                  wq_ref, bq_ref, wk_ref, bk_ref, wv_ref, bv_ref,
                  wo_ref, bo_ref,
                  ln2g_ref, ln2b_ref,
                  w1_ref, b1_ref, w2_ref, b2_ref,
                  flng_ref, flnb_ref,
                  out_ref, *, heads, b_blk, sq, skv, mxu_dtype):
    layer = pl.program_id(1)
    last = pl.num_programs(1) - 1

    # The activation is carried in the output block (resident across the layer axis).
    @pl.when(layer == 0)
    def _():
        out_ref[...] = x_ref[...]

    x = out_ref[...].astype(jnp.float32)          # (b_blk*sq, D)
    kv = kv_ref[...]                              # (b_blk*skv, D)
    D = x.shape[-1]
    dk = D // heads
    scale = 1.0 / math.sqrt(dk)
    amask = amask_ref[...]                        # (b_blk, 1, skv) additive key mask

    def mm(a, b):
        return jnp.dot(a.astype(mxu_dtype), b.astype(mxu_dtype),
                       preferred_element_type=jnp.float32)

    # --- pre-attention LayerNorm ---
    xn = _layernorm(x, ln1g_ref[0], ln1b_ref[0])

    # --- multi-head cross-attention; heads indexed on a leading weight axis, so no
    #     lane-offset slicing of activations and no head concatenation ---
    acc = None
    for h in range(heads):
        q = mm(xn, wq_ref[0, h]) + bq_ref[0, h]    # (b_blk*sq, dk)
        k = mm(kv, wk_ref[0, h]) + bk_ref[0, h]    # (b_blk*skv, dk)
        v = mm(kv, wv_ref[0, h]) + bv_ref[0, h]    # (b_blk*skv, dk)
        # leading-dim (sublane) splits only; minor dim unchanged -> layout-preserving
        q3 = q.reshape(b_blk, sq, dk)
        k3 = k.reshape(b_blk, skv, dk)
        v3 = v.reshape(b_blk, skv, dk)
        s = jnp.einsum("bqd,bkd->bqk", q3.astype(mxu_dtype), k3.astype(mxu_dtype),
                       preferred_element_type=jnp.float32) * scale
        s = s + amask
        s = s - jnp.max(s, axis=-1, keepdims=True)
        p = jnp.exp(s)
        p = p / jnp.sum(p, axis=-1, keepdims=True)          # exact division (numerics)
        ctx3 = jnp.einsum("bqk,bkd->bqd", p.astype(mxu_dtype), v3.astype(mxu_dtype),
                          preferred_element_type=jnp.float32)
        ctx = ctx3.reshape(b_blk * sq, dk)
        part = mm(ctx, wo_ref[0, h])                          # Wo folded per head
        acc = part if acc is None else acc + part

    attn_out = acc + bo_ref[0]

    # --- residual (dropout == identity in eval) ---
    h1 = attn_out + x

    # --- PositionwiseFeedForward: LN -> W1 -> ReLU -> W2 -> residual ---
    hn = _layernorm(h1, ln2g_ref[0], ln2b_ref[0])
    inter = jnp.maximum(mm(hn, w1_ref[0]) + b1_ref[0], 0.0)
    y = mm(inter, w2_ref[0]) + b2_ref[0] + h1

    @pl.when(layer == last)
    def _():
        out_ref[...] = _layernorm(y, flng_ref[...], flnb_ref[...]).astype(out_ref.dtype)

    @pl.when(layer < last)
    def _():
        out_ref[...] = y.astype(out_ref.dtype)


def cross_transformer(sql, plan, log, metrics, sql_mask, plan_mask, params, heads,
                      batch_block=None, mxu_dtype=jnp.float32):
    """CrossTransformer.forward: encoder stack over sql with cross-modal kv."""
    del sql_mask  # keys come from plan/log/metrics; sql_mask not applied to keys
    B, Sq, D = sql.shape
    kv = jnp.concatenate([plan, log, metrics], axis=1)
    Skv = kv.shape[1]
    layers = params["layers"]
    L = len(layers)
    d_ff = layers[0]["w1"].shape[-1]
    assert D % heads == 0
    dk = D // heads

    if batch_block is None:
        # >=2 batch grid steps when possible (v7x megacore), several batch elems per step.
        batch_block = B // 2 if (B % 2 == 0 and B >= 2) else B
    assert B % batch_block == 0
    nb = B // batch_block

    # Flatten batch x seq into the sublane axis (metadata-only reshape outside the kernel).
    x2 = sql.reshape(B * Sq, D)
    kv2 = kv.reshape(B * Skv, D)

    # Additive key mask: -1e18 at padded plan keys, 0 for log/metrics keys.
    kv_mask = jnp.concatenate(
        [plan_mask.astype(jnp.float32),
         jnp.zeros((B, 1, log.shape[1]), jnp.float32),
         jnp.zeros((B, 1, metrics.shape[1]), jnp.float32)], axis=-1)
    amask = kv_mask * jnp.float32(NEG_INF)                     # (B, 1, Skv)

    def stack(name):
        return jnp.stack([lp[name] for lp in layers], axis=0)

    # Per-head weight layout (heads on a leading axis -> zero-cost in-kernel views).
    def heads_in(w):                                           # (L,D,D) -> (L,H,D,dk)
        return w.reshape(L, D, heads, dk).transpose(0, 2, 1, 3)

    def heads_b(b):                                            # (L,1,D) -> (L,H,1,dk)
        return b.reshape(L, heads, dk)[:, :, None, :]

    weights = [
        stack("ln1_g"), stack("ln1_b"),
        heads_in(stack("wq")), heads_b(stack("bq")),
        heads_in(stack("wk")), heads_b(stack("bk")),
        heads_in(stack("wv")), heads_b(stack("bv")),
        stack("wo").reshape(L, heads, dk, D), stack("bo"),
        stack("ln2_g"), stack("ln2_b"),
        stack("w1"), stack("b1"), stack("w2"), stack("b2"),
    ]
    finals = [params["final_ln_g"], params["final_ln_b"]]

    x_spec = pl.BlockSpec((batch_block * Sq, D), lambda b, l: (b, 0))
    kv_spec = pl.BlockSpec((batch_block * Skv, D), lambda b, l: (b, 0))
    m_spec = pl.BlockSpec((batch_block, 1, Skv), lambda b, l: (b, 0, 0))

    def layer_spec(a):
        zeros = (0,) * (a.ndim - 1)
        return pl.BlockSpec((1,) + a.shape[1:], lambda b, l, z=zeros: (l,) + z)

    def const_spec(a):
        zeros = (0,) * a.ndim
        return pl.BlockSpec(a.shape, lambda b, l, z=zeros: z)

    in_arrays = [x2, kv2, amask] + weights + finals
    in_specs = ([x_spec, kv_spec, m_spec]
                + [layer_spec(a) for a in weights]
                + [const_spec(a) for a in finals])
    out_spec = pl.BlockSpec((batch_block * Sq, D), lambda b, l: (b, 0))

    # Explicit VMEM budget: double-buffered per-step blocks + headroom for intermediates.
    itemsize = 4
    per_step = (batch_block * Sq * D + batch_block * Skv * D + batch_block * Skv) * itemsize
    per_step += sum(a.size // a.shape[0] for a in weights) * itemsize
    per_step += sum(a.size for a in finals) * itemsize
    per_step += batch_block * Sq * D * itemsize                # output block
    vmem_limit = int(min(48 << 20, max(32 << 20, 2 * per_step + (8 << 20))))

    flops_per_layer = (2 * Sq * D * D            # Q projection
                       + 4 * Skv * D * D         # K + V projections
                       + 4 * Sq * Skv * D        # scores + context
                       + 2 * Sq * D * D          # output projection
                       + 4 * Sq * D * d_ff)      # FFN
    bytes_accessed = int(x2.size * 4 + kv2.size * 4 + amask.size * 4
                         + nb * sum(int(a.size) for a in weights) * 4
                         + sum(int(a.size) for a in finals) * 4
                         + B * Sq * D * 4)
    cost = pl.CostEstimate(
        flops=int(B * L * flops_per_layer),
        transcendentals=int(B * L * heads * Sq * Skv + B * (2 * L + 1) * Sq),
        bytes_accessed=bytes_accessed,
    )

    out2 = pl.pallas_call(
        functools.partial(_layer_kernel, heads=heads, b_blk=batch_block,
                          sq=Sq, skv=Skv, mxu_dtype=mxu_dtype),
        out_shape=jax.ShapeDtypeStruct((B * Sq, D), sql.dtype),
        grid=(nb, L),
        in_specs=in_specs,
        out_specs=out_spec,
        compiler_params=pltpu.CompilerParams(
            dimension_semantics=("parallel", "arbitrary"),
            vmem_limit_bytes=vmem_limit),
        cost_estimate=cost,
    )(*in_arrays)
    return out2.reshape(B, Sq, D)


def init_params(key, num_layers, d_model, d_ff):
    def lin(k, fan_in, shape):
        return jax.random.normal(k, shape, jnp.float32) / math.sqrt(fan_in)

    layers = []
    for i in range(num_layers):
        ks = jax.random.split(jax.random.fold_in(key, i), 6)
        layers.append(dict(
            ln1_g=jnp.ones((1, d_model), jnp.float32),
            ln1_b=jnp.zeros((1, d_model), jnp.float32),
            wq=lin(ks[0], d_model, (d_model, d_model)),
            bq=jnp.zeros((1, d_model), jnp.float32),
            wk=lin(ks[1], d_model, (d_model, d_model)),
            bk=jnp.zeros((1, d_model), jnp.float32),
            wv=lin(ks[2], d_model, (d_model, d_model)),
            bv=jnp.zeros((1, d_model), jnp.float32),
            wo=lin(ks[3], d_model, (d_model, d_model)),
            bo=jnp.zeros((1, d_model), jnp.float32),
            ln2_g=jnp.ones((1, d_model), jnp.float32),
            ln2_b=jnp.zeros((1, d_model), jnp.float32),
            w1=lin(ks[4], d_model, (d_model, d_ff)),
            b1=jnp.zeros((1, d_ff), jnp.float32),
            w2=lin(ks[5], d_ff, (d_ff, d_model)),
            b2=jnp.zeros((1, d_model), jnp.float32),
        ))
    return dict(layers=layers,
                final_ln_g=jnp.ones((1, d_model), jnp.float32),
                final_ln_b=jnp.zeros((1, d_model), jnp.float32))


if __name__ == "__main__":
    num_layers, d_model, heads, d_ff = 2, 32, 4, 64
    B, Sq, Sp, Sl, Sm = 2, 8, 8, 4, 4

    key = jax.random.PRNGKey(0)
    k_sql, k_plan, k_log, k_met, k_par = jax.random.split(key, 5)
    sql = jax.random.normal(k_sql, (B, Sq, d_model), jnp.float32)
    plan = jax.random.normal(k_plan, (B, Sp, d_model), jnp.float32)
    log = jax.random.normal(k_log, (B, Sl, d_model), jnp.float32)
    metrics = jax.random.normal(k_met, (B, Sm, d_model), jnp.float32)

    sql_mask = jnp.zeros((B, 1, Sq), jnp.float32)
    plan_mask = jnp.zeros((B, 1, Sp), jnp.float32).at[0, 0, -2:].set(1.0)  # mask 2 plan keys of batch 0

    params = init_params(k_par, num_layers, d_model, d_ff)

    out = cross_transformer(sql, plan, log, metrics, sql_mask, plan_mask, params, heads)
    out = jax.block_until_ready(out)
    assert out.shape == (B, Sq, d_model) and out.dtype == jnp.float32
    assert bool(jnp.all(jnp.isfinite(out)))
    print("KERNEL_OK")
</pallas_src>

<mosaic_0001>
module attributes {stable_mosaic.version = 11 : i64} {
  func.func @_layer_kernel(%arg0: i32, %arg1: i32, %arg2: memref<8x32xf32, #tpu.memory_space<vmem>>, %arg3: memref<16x32xf32, #tpu.memory_space<vmem>>, %arg4: memref<1x1x16xf32, #tpu.memory_space<vmem>>, %arg5: memref<1x1x32xf32, #tpu.memory_space<vmem>>, %arg6: memref<1x1x32xf32, #tpu.memory_space<vmem>>, %arg7: memref<1x4x32x8xf32, #tpu.memory_space<vmem>>, %arg8: memref<1x4x1x8xf32, #tpu.memory_space<vmem>>, %arg9: memref<1x4x32x8xf32, #tpu.memory_space<vmem>>, %arg10: memref<1x4x1x8xf32, #tpu.memory_space<vmem>>, %arg11: memref<1x4x32x8xf32, #tpu.memory_space<vmem>>, %arg12: memref<1x4x1x8xf32, #tpu.memory_space<vmem>>, %arg13: memref<1x4x8x32xf32, #tpu.memory_space<vmem>>, %arg14: memref<1x1x32xf32, #tpu.memory_space<vmem>>, %arg15: memref<1x1x32xf32, #tpu.memory_space<vmem>>, %arg16: memref<1x1x32xf32, #tpu.memory_space<vmem>>, %arg17: memref<1x32x64xf32, #tpu.memory_space<vmem>>, %arg18: memref<1x1x64xf32, #tpu.memory_space<vmem>>, %arg19: memref<1x64x32xf32, #tpu.memory_space<vmem>>, %arg20: memref<1x1x32xf32, #tpu.memory_space<vmem>>, %arg21: memref<1x32xf32, #tpu.memory_space<vmem>>, %arg22: memref<1x32xf32, #tpu.memory_space<vmem>>, %arg23: memref<8x32xf32, #tpu.memory_space<vmem>>) attributes {dimension_semantics = [#tpu.dimension_semantics<parallel>, #tpu.dimension_semantics<arbitrary>], iteration_bounds = array<i64: 2, 2>, scalar_prefetch = 0 : i64, scratch_operands = 0 : i64, tpu.core_type = #tpu.core_type<tc>, window_params = [{transform_indices = @transform_0, window_bounds = array<i64: 8, 32>}, {transform_indices = @transform_1, window_bounds = array<i64: 16, 32>}, {transform_indices = @transform_2, window_bounds = array<i64: 1, 1, 16>}, {transform_indices = @transform_3, window_bounds = array<i64: 1, 1, 32>}, {transform_indices = @transform_4, window_bounds = array<i64: 1, 1, 32>}, {transform_indices = @transform_5, window_bounds = array<i64: 1, 4, 32, 8>}, {transform_indices = @transform_6, window_bounds = array<i64: 1, 4, 1, 8>}, {transform_indices = @transform_7, window_bounds = array<i64: 1, 4, 32, 8>}, {transform_indices = @transform_8, window_bounds = array<i64: 1, 4, 1, 8>}, {transform_indices = @transform_9, window_bounds = array<i64: 1, 4, 32, 8>}, {transform_indices = @transform_10, window_bounds = array<i64: 1, 4, 1, 8>}, {transform_indices = @transform_11, window_bounds = array<i64: 1, 4, 8, 32>}, {transform_indices = @transform_12, window_bounds = array<i64: 1, 1, 32>}, {transform_indices = @transform_13, window_bounds = array<i64: 1, 1, 32>}, {transform_indices = @transform_14, window_bounds = array<i64: 1, 1, 32>}, {transform_indices = @transform_15, window_bounds = array<i64: 1, 32, 64>}, {transform_indices = @transform_16, window_bounds = array<i64: 1, 1, 64>}, {transform_indices = @transform_17, window_bounds = array<i64: 1, 64, 32>}, {transform_indices = @transform_18, window_bounds = array<i64: 1, 1, 32>}, {pipeline_mode = #tpu.pipeline_mode<synchronous>, transform_indices = @transform_19, window_bounds = array<i64: 1, 32>}, {pipeline_mode = #tpu.pipeline_mode<synchronous>, transform_indices = @transform_20, window_bounds = array<i64: 1, 32>}, {transform_indices = @transform_21, window_bounds = array<i64: 8, 32>}]} {
    %c0_i32 = arith.constant 0 : i32
    %0 = arith.cmpi eq, %arg1, %c0_i32 : i32
    %1 = arith.extui %0 : i1 to i32
    %c0_i32_0 = arith.constant 0 : i32
    %2 = arith.cmpi ne, %1, %c0_i32_0 : i32
    scf.if %2 {
      %c0_194 = arith.constant 0 : index
      %c0_195 = arith.constant 0 : index
      %257 = vector.load %arg2[%c0_194, %c0_195] : memref<8x32xf32, #tpu.memory_space<vmem>>, vector<8x32xf32>
      %c0_196 = arith.constant 0 : index
      %c0_197 = arith.constant 0 : index
      %258 = vector.load %arg23[%c0_196, %c0_197] : memref<8x32xf32, #tpu.memory_space<vmem>>, vector<8x32xf32>
      tpu.vector_store %arg23[%c0_196, %c0_197], %257 {strides = array<i32>} : memref<8x32xf32, #tpu.memory_space<vmem>>, vector<8x32xf32>,
    } else {
    }
    %c0 = arith.constant 0 : index
    %c0_1 = arith.constant 0 : index
    %3 = vector.load %arg23[%c0, %c0_1] : memref<8x32xf32, #tpu.memory_space<vmem>>, vector<8x32xf32>
    %c0_2 = arith.constant 0 : index
    %c0_3 = arith.constant 0 : index
    %4 = vector.load %arg3[%c0_2, %c0_3] : memref<16x32xf32, #tpu.memory_space<vmem>>, vector<16x32xf32>
    %c0_4 = arith.constant 0 : index
    %c0_5 = arith.constant 0 : index
    %c0_6 = arith.constant 0 : index
    %5 = vector.load %arg4[%c0_4, %c0_5, %c0_6] : memref<1x1x16xf32, #tpu.memory_space<vmem>>, vector<1x1x16xf32>
    %c0_7 = arith.constant 0 : index
    %c0_8 = arith.constant 0 : index
    %c0_9 = arith.constant 0 : index
    %6 = vector.load %arg5[%c0_7, %c0_8, %c0_9] : memref<1x1x32xf32, #tpu.memory_space<vmem>>, vector<1x1x32xf32>
    %7 = vector.shape_cast %6 : vector<1x1x32xf32> to vector<1x32xf32>
    %c0_10 = arith.constant 0 : index
    %c0_11 = arith.constant 0 : index
    %c0_12 = arith.constant 0 : index
    %8 = vector.load %arg6[%c0_10, %c0_11, %c0_12] : memref<1x1x32xf32, #tpu.memory_space<vmem>>, vector<1x1x32xf32>
    %9 = vector.shape_cast %8 : vector<1x1x32xf32> to vector<1x32xf32>
    %cst = arith.constant dense<0.000000e+00> : vector<8xf32>
    %10 = vector.multi_reduction <add>, %3, %cst [1] : vector<8x32xf32> to vector<8xf32>
    %11 = vector.shape_cast %10 : vector<8xf32> to vector<8x1xf32>
    %cst_13 = arith.constant 3.200000e+01 : f32
    %12 = vector.broadcast %cst_13 : f32 to vector<8x1xf32>
    %13 = arith.divf %11, %12 : vector<8x1xf32>
    %14 = vector.broadcast %13 : vector<8x1xf32> to vector<8x32xf32>
    %15 = arith.subf %3, %14 : vector<8x32xf32>
    %16 = arith.mulf %15, %15 : vector<8x32xf32>
    %cst_14 = arith.constant dense<0.000000e+00> : vector<8xf32>
    %17 = vector.multi_reduction <add>, %16, %cst_14 [1] : vector<8x32xf32> to vector<8xf32>
    %18 = vector.shape_cast %17 : vector<8xf32> to vector<8x1xf32>
    %cst_15 = arith.constant 3.100000e+01 : f32
    %19 = vector.broadcast %cst_15 : f32 to vector<8x1xf32>
    %20 = arith.divf %18, %19 : vector<8x1xf32>
    %21 = vector.broadcast %7 : vector<1x32xf32> to vector<8x32xf32>
    %22 = arith.mulf %21, %15 : vector<8x32xf32>
    %23 = math.sqrt %20 : vector<8x1xf32>
    %cst_16 = arith.constant 9.99999997E-7 : f32
    %24 = vector.broadcast %cst_16 : f32 to vector<8x1xf32>
    %25 = arith.addf %23, %24 : vector<8x1xf32>
    %26 = vector.broadcast %25 : vector<8x1xf32> to vector<8x32xf32>
    %27 = arith.divf %22, %26 : vector<8x32xf32>
    %28 = vector.broadcast %9 : vector<1x32xf32> to vector<8x32xf32>
    %29 = arith.addf %27, %28 : vector<8x32xf32>
    %c0_17 = arith.constant 0 : index
    %c0_18 = arith.constant 0 : index
    %c0_19 = arith.constant 0 : index
    %c0_20 = arith.constant 0 : index
    %30 = vector.load %arg7[%c0_17, %c0_18, %c0_19, %c0_20] : memref<1x4x32x8xf32, #tpu.memory_space<vmem>>, vector<1x1x32x8xf32>
    %31 = vector.shape_cast %30 : vector<1x1x32x8xf32> to vector<32x8xf32>
    %cst_21 = arith.constant dense<0.000000e+00> : vector<8x8xf32>
    %32 = tpu.matmul %29, %31, %cst_21 {dimension_numbers = #tpu.dot_dimension_numbers<[1], [0], [0], [1], [0, 0, 1, 1], [], []>} : vector<8x32xf32>, vector<32x8xf32>, vector<8x8xf32> -> vector<8x8xf32>
    %c0_22 = arith.constant 0 : index
    %c0_23 = arith.constant 0 : index
    %c0_24 = arith.constant 0 : index
    %c0_25 = arith.constant 0 : index
    %33 = vector.load %arg8[%c0_22, %c0_23, %c0_24, %c0_25] : memref<1x4x1x8xf32, #tpu.memory_space<vmem>>, vector<1x1x1x8xf32>
    %34 = vector.shape_cast %33 : vector<1x1x1x8xf32> to vector<1x8xf32>
    %35 = vector.broadcast %34 : vector<1x8xf32> to vector<8x8xf32>
    %36 = arith.addf %32, %35 : vector<8x8xf32>
    %c0_26 = arith.constant 0 : index
    %c0_27 = arith.constant 0 : index
    %c0_28 = arith.constant 0 : index
    %c0_29 = arith.constant 0 : index
    %37 = vector.load %arg9[%c0_26, %c0_27, %c0_28, %c0_29] : memref<1x4x32x8xf32, #tpu.memory_space<vmem>>, vector<1x1x32x8xf32>
    %38 = vector.shape_cast %37 : vector<1x1x32x8xf32> to vector<32x8xf32>
    %cst_30 = arith.constant dense<0.000000e+00> : vector<16x8xf32>
    %39 = tpu.matmul %4, %38, %cst_30 {dimension_numbers = #tpu.dot_dimension_numbers<[1], [0], [0], [1], [0, 0, 1, 1], [], []>} : vector<16x32xf32>, vector<32x8xf32>, vector<16x8xf32> -> vector<16x8xf32>
    %c0_31 = arith.constant 0 : index
    %c0_32 = arith.constant 0 : index
    %c0_33 = arith.constant 0 : index
    %c0_34 = arith.constant 0 : index
    %40 = vector.load %arg10[%c0_31, %c0_32, %c0_33, %c0_34] : memref<1x4x1x8xf32, #tpu.memory_space<vmem>>, vector<1x1x1x8xf32>
    %41 = vector.shape_cast %40 : vector<1x1x1x8xf32> to vector<1x8xf32>
    %42 = vector.broadcast %41 : vector<1x8xf32> to vector<16x8xf32>
    %43 = arith.addf %39, %42 : vector<16x8xf32>
    %c0_35 = arith.constant 0 : index
    %c0_36 = arith.constant 0 : index
    %c0_37 = arith.constant 0 : index
    %c0_38 = arith.constant 0 : index
    %44 = vector.load %arg11[%c0_35, %c0_36, %c0_37, %c0_38] : memref<1x4x32x8xf32, #tpu.memory_space<vmem>>, vector<1x1x32x8xf32>
    %45 = vector.shape_cast %44 : vector<1x1x32x8xf32> to vector<32x8xf32>
    %cst_39 = arith.constant dense<0.000000e+00> : vector<16x8xf32>
    %46 = tpu.matmul %4, %45, %cst_39 {dimension_numbers = #tpu.dot_dimension_numbers<[1], [0], [0], [1], [0, 0, 1, 1], [], []>} : vector<16x32xf32>, vector<32x8xf32>, vector<16x8xf32> -> vector<16x8xf32>
    %c0_40 = arith.constant 0 : index
    %c0_41 = arith.constant 0 : index
    %c0_42 = arith.constant 0 : index
    %c0_43 = arith.constant 0 : index
    %47 = vector.load %arg12[%c0_40, %c0_41, %c0_42, %c0_43] : memref<1x4x1x8xf32, #tpu.memory_space<vmem>>, vector<1x1x1x8xf32>
    %48 = vector.shape_cast %47 : vector<1x1x1x8xf32> to vector<1x8xf32>
    %49 = vector.broadcast %48 : vector<1x8xf32> to vector<16x8xf32>
    %50 = arith.addf %46, %49 : vector<16x8xf32>
    %51 = vector.shape_cast %36 : vector<8x8xf32> to vector<1x8x8xf32>
    %52 = vector.shape_cast %43 : vector<16x8xf32> to vector<1x16x8xf32>
    %53 = vector.shape_cast %50 : vector<16x8xf32> to vector<1x16x8xf32>
    "tpu.trace_start"() <{level = 10 : i32, message = "bqd,bkd->bqk"}> : () -> ()
    %cst_44 = arith.constant dense<0.000000e+00> : vector<1x8x16xf32>
    %54 = tpu.matmul %51, %52, %cst_44 {dimension_numbers = #tpu.dot_dimension_numbers<[2], [2], [1], [1], [0, 0, 0, 1, 1, 1], [0], [0]>} : vector<1x8x8xf32>, vector<1x16x8xf32>, vector<1x8x16xf32> -> vector<1x8x16xf32>
    "tpu.trace_stop"() : () -> ()
    %cst_45 = arith.constant 0.353553385 : f32
    %55 = vector.broadcast %cst_45 : f32 to vector<1x8x16xf32>
    %56 = arith.mulf %54, %55 : vector<1x8x16xf32>
    %57 = vector.broadcast %5 : vector<1x1x16xf32> to vector<1x8x16xf32>
    %58 = arith.addf %56, %57 : vector<1x8x16xf32>
    %cst_46 = arith.constant dense<0xFF800000> : vector<1x8xf32>
    %59 = vector.multi_reduction <maximumf>, %58, %cst_46 [2] : vector<1x8x16xf32> to vector<1x8xf32>
    %60 = vector.shape_cast %59 : vector<1x8xf32> to vector<1x8x1xf32>
    %61 = vector.broadcast %60 : vector<1x8x1xf32> to vector<1x8x16xf32>
    %62 = arith.subf %58, %61 : vector<1x8x16xf32>
    %63 = math.exp %62 : vector<1x8x16xf32>
    %cst_47 = arith.constant dense<0.000000e+00> : vector<1x8xf32>
    %64 = vector.multi_reduction <add>, %63, %cst_47 [2] : vector<1x8x16xf32> to vector<1x8xf32>
    %65 = vector.shape_cast %64 : vector<1x8xf32> to vector<1x8x1xf32>
    %66 = vector.broadcast %65 : vector<1x8x1xf32> to vector<1x8x16xf32>
    %67 = arith.divf %63, %66 : vector<1x8x16xf32>
    "tpu.trace_start"() <{level = 10 : i32, message = "bqk,bkd->bqd"}> : () -> ()
    %cst_48 = arith.constant dense<0.000000e+00> : vector<1x8x8xf32>
    %68 = tpu.matmul %67, %53, %cst_48 {dimension_numbers = #tpu.dot_dimension_numbers<[2], [1], [1], [2], [0, 0, 0, 1, 1, 2], [0], [0]>} : vector<1x8x16xf32>, vector<1x16x8xf32>, vector<1x8x8xf32> -> vector<1x8x8xf32>
    "tpu.trace_stop"() : () -> ()
    %69 = vector.shape_cast %68 : vector<1x8x8xf32> to vector<8x8xf32>
    %c0_49 = arith.constant 0 : index
    %c0_50 = arith.constant 0 : index
    %c0_51 = arith.constant 0 : index
    %c0_52 = arith.constant 0 : index
    %70 = vector.load %arg13[%c0_49, %c0_50, %c0_51, %c0_52] : memref<1x4x8x32xf32, #tpu.memory_space<vmem>>, vector<1x1x8x32xf32>
    %71 = vector.shape_cast %70 : vector<1x1x8x32xf32> to vector<8x32xf32>
    %cst_53 = arith.constant dense<0.000000e+00> : vector<8x32xf32>
    %72 = tpu.matmul %69, %71, %cst_53 {dimension_numbers = #tpu.dot_dimension_numbers<[1], [0], [0], [1], [0, 0, 1, 1], [], []>} : vector<8x8xf32>, vector<8x32xf32>, vector<8x32xf32> -> vector<8x32xf32>
    %c0_54 = arith.constant 0 : index
    %c1 = arith.constant 1 : index
    %c0_55 = arith.constant 0 : index
    %c0_56 = arith.constant 0 : index
    %73 = vector.load %arg7[%c0_54, %c1, %c0_55, %c0_56] : memref<1x4x32x8xf32, #tpu.memory_space<vmem>>, vector<1x1x32x8xf32>
    %74 = vector.shape_cast %73 : vector<1x1x32x8xf32> to vector<32x8xf32>
    %cst_57 = arith.constant dense<0.000000e+00> : vector<8x8xf32>
    %75 = tpu.matmul %29, %74, %cst_57 {dimension_numbers = #tpu.dot_dimension_numbers<[1], [0], [0], [1], [0, 0, 1, 1], [], []>} : vector<8x32xf32>, vector<32x8xf32>, vector<8x8xf32> -> vector<8x8xf32>
    %c0_58 = arith.constant 0 : index
    %c1_59 = arith.constant 1 : index
    %c0_60 = arith.constant 0 : index
    %c0_61 = arith.constant 0 : index
    %76 = vector.load %arg8[%c0_58, %c1_59, %c0_60, %c0_61] : memref<1x4x1x8xf32, #tpu.memory_space<vmem>>, vector<1x1x1x8xf32>
    %77 = vector.shape_cast %76 : vector<1x1x1x8xf32> to vector<1x8xf32>
    %78 = vector.broadcast %77 : vector<1x8xf32> to vector<8x8xf32>
    %79 = arith.addf %75, %78 : vector<8x8xf32>
    %c0_62 = arith.constant 0 : index
    %c1_63 = arith.constant 1 : index
    %c0_64 = arith.constant 0 : index
    %c0_65 = arith.constant 0 : index
    %80 = vector.load %arg9[%c0_62, %c1_63, %c0_64, %c0_65] : memref<1x4x32x8xf32, #tpu.memory_space<vmem>>, vector<1x1x32x8xf32>
    %81 = vector.shape_cast %80 : vector<1x1x32x8xf32> to vector<32x8xf32>
    %cst_66 = arith.constant dense<0.000000e+00> : vector<16x8xf32>
    %82 = tpu.matmul %4, %81, %cst_66 {dimension_numbers = #tpu.dot_dimension_numbers<[1], [0], [0], [1], [0, 0, 1, 1], [], []>} : vector<16x32xf32>, vector<32x8xf32>, vector<16x8xf32> -> vector<16x8xf32>
    %c0_67 = arith.constant 0 : index
    %c1_68 = arith.constant 1 : index
    %c0_69 = arith.constant 0 : index
    %c0_70 = arith.constant 0 : index
    %83 = vector.load %arg10[%c0_67, %c1_68, %c0_69, %c0_70] : memref<1x4x1x8xf32, #tpu.memory_space<vmem>>, vector<1x1x1x8xf32>
    %84 = vector.shape_cast %83 : vector<1x1x1x8xf32> to vector<1x8xf32>
    %85 = vector.broadcast %84 : vector<1x8xf32> to vector<16x8xf32>
    %86 = arith.addf %82, %85 : vector<16x8xf32>
    %c0_71 = arith.constant 0 : index
    %c1_72 = arith.constant 1 : index
    %c0_73 = arith.constant 0 : index
    %c0_74 = arith.constant 0 : index
    %87 = vector.load %arg11[%c0_71, %c1_72, %c0_73, %c0_74] : memref<1x4x32x8xf32, #tpu.memory_space<vmem>>, vector<1x1x32x8xf32>
    %88 = vector.shape_cast %87 : vector<1x1x32x8xf32> to vector<32x8xf32>
    %cst_75 = arith.constant dense<0.000000e+00> : vector<16x8xf32>
    %89 = tpu.matmul %4, %88, %cst_75 {dimension_numbers = #tpu.dot_dimension_numbers<[1], [0], [0], [1], [0, 0, 1, 1], [], []>} : vector<16x32xf32>, vector<32x8xf32>, vector<16x8xf32> -> vector<16x8xf32>
    %c0_76 = arith.constant 0 : index
    %c1_77 = arith.constant 1 : index
    %c0_78 = arith.constant 0 : index
    %c0_79 = arith.constant 0 : index
    %90 = vector.load %arg12[%c0_76, %c1_77, %c0_78, %c0_79] : memref<1x4x1x8xf32, #tpu.memory_space<vmem>>, vector<1x1x1x8xf32>
    %91 = vector.shape_cast %90 : vector<1x1x1x8xf32> to vector<1x8xf32>
    %92 = vector.broadcast %91 : vector<1x8xf32> to vector<16x8xf32>
    %93 = arith.addf %89, %92 : vector<16x8xf32>
    %94 = vector.shape_cast %79 : vector<8x8xf32> to vector<1x8x8xf32>
    %95 = vector.shape_cast %86 : vector<16x8xf32> to vector<1x16x8xf32>
    %96 = vector.shape_cast %93 : vector<16x8xf32> to vector<1x16x8xf32>
    "tpu.trace_start"() <{level = 10 : i32, message = "bqd,bkd->bqk"}> : () -> ()
    %cst_80 = arith.constant dense<0.000000e+00> : vector<1x8x16xf32>
    %97 = tpu.matmul %94, %95, %cst_80 {dimension_numbers = #tpu.dot_dimension_numbers<[2], [2], [1], [1], [0, 0, 0, 1, 1, 1], [0], [0]>} : vector<1x8x8xf32>, vector<1x16x8xf32>, vector<1x8x16xf32> -> vector<1x8x16xf32>
    "tpu.trace_stop"() : () -> ()
    %cst_81 = arith.constant 0.353553385 : f32
    %98 = vector.broadcast %cst_81 : f32 to vector<1x8x16xf32>
    %99 = arith.mulf %97, %98 : vector<1x8x16xf32>
    %100 = vector.broadcast %5 : vector<1x1x16xf32> to vector<1x8x16xf32>
    %101 = arith.addf %99, %100 : vector<1x8x16xf32>
    %cst_82 = arith.constant dense<0xFF800000> : vector<1x8xf32>
    %102 = vector.multi_reduction <maximumf>, %101, %cst_82 [2] : vector<1x8x16xf32> to vector<1x8xf32>
    %103 = vector.shape_cast %102 : vector<1x8xf32> to vector<1x8x1xf32>
    %104 = vector.broadcast %103 : vector<1x8x1xf32> to vector<1x8x16xf32>
    %105 = arith.subf %101, %104 : vector<1x8x16xf32>
    %106 = math.exp %105 : vector<1x8x16xf32>
    %cst_83 = arith.constant dense<0.000000e+00> : vector<1x8xf32>
    %107 = vector.multi_reduction <add>, %106, %cst_83 [2] : vector<1x8x16xf32> to vector<1x8xf32>
    %108 = vector.shape_cast %107 : vector<1x8xf32> to vector<1x8x1xf32>
    %109 = vector.broadcast %108 : vector<1x8x1xf32> to vector<1x8x16xf32>
    %110 = arith.divf %106, %109 : vector<1x8x16xf32>
    "tpu.trace_start"() <{level = 10 : i32, message = "bqk,bkd->bqd"}> : () -> ()
    %cst_84 = arith.constant dense<0.000000e+00> : vector<1x8x8xf32>
    %111 = tpu.matmul %110, %96, %cst_84 {dimension_numbers = #tpu.dot_dimension_numbers<[2], [1], [1], [2], [0, 0, 0, 1, 1, 2], [0], [0]>} : vector<1x8x16xf32>, vector<1x16x8xf32>, vector<1x8x8xf32> -> vector<1x8x8xf32>
    "tpu.trace_stop"() : () -> ()
    %112 = vector.shape_cast %111 : vector<1x8x8xf32> to vector<8x8xf32>
    %c0_85 = arith.constant 0 : index
    %c1_86 = arith.constant 1 : index
    %c0_87 = arith.constant 0 : index
    %c0_88 = arith.constant 0 : index
    %113 = vector.load %arg13[%c0_85, %c1_86, %c0_87, %c0_88] : memref<1x4x8x32xf32, #tpu.memory_space<vmem>>, vector<1x1x8x32xf32>
    %114 = vector.shape_cast %113 : vector<1x1x8x32xf32> to vector<8x32xf32>
    %cst_89 = arith.constant dense<0.000000e+00> : vector<8x32xf32>
    %115 = tpu.matmul %112, %114, %cst_89 {dimension_numbers = #tpu.dot_dimension_numbers<[1], [0], [0], [1], [0, 0, 1, 1], [], []>} : vector<8x8xf32>, vector<8x32xf32>, vector<8x32xf32> -> vector<8x32xf32>
    %116 = arith.addf %72, %115 : vector<8x32xf32>
    %c0_90 = arith.constant 0 : index
    %c2 = arith.constant 2 : index
    %c0_91 = arith.constant 0 : index
    %c0_92 = arith.constant 0 : index
    %117 = vector.load %arg7[%c0_90, %c2, %c0_91, %c0_92] : memref<1x4x32x8xf32, #tpu.memory_space<vmem>>, vector<1x1x32x8xf32>
    %118 = vector.shape_cast %117 : vector<1x1x32x8xf32> to vector<32x8xf32>
    %cst_93 = arith.constant dense<0.000000e+00> : vector<8x8xf32>
    %119 = tpu.matmul %29, %118, %cst_93 {dimension_numbers = #tpu.dot_dimension_numbers<[1], [0], [0], [1], [0, 0, 1, 1], [], []>} : vector<8x32xf32>, vector<32x8xf32>, vector<8x8xf32> -> vector<8x8xf32>
    %c0_94 = arith.constant 0 : index
    %c2_95 = arith.constant 2 : index
    %c0_96 = arith.constant 0 : index
    %c0_97 = arith.constant 0 : index
    %120 = vector.load %arg8[%c0_94, %c2_95, %c0_96, %c0_97] : memref<1x4x1x8xf32, #tpu.memory_space<vmem>>, vector<1x1x1x8xf32>
    %121 = vector.shape_cast %120 : vector<1x1x1x8xf32> to vector<1x8xf32>
    %122 = vector.broadcast %121 : vector<1x8xf32> to vector<8x8xf32>
    %123 = arith.addf %119, %122 : vector<8x8xf32>
    %c0_98 = arith.constant 0 : index
    %c2_99 = arith.constant 2 : index
    %c0_100 = arith.constant 0 : index
    %c0_101 = arith.constant 0 : index
    %124 = vector.load %arg9[%c0_98, %c2_99, %c0_100, %c0_101] : memref<1x4x32x8xf32, #tpu.memory_space<vmem>>, vector<1x1x32x8xf32>
    %125 = vector.shape_cast %124 : vector<1x1x32x8xf32> to vector<32x8xf32>
    %cst_102 = arith.constant dense<0.000000e+00> : vector<16x8xf32>
    %126 = tpu.matmul %4, %125, %cst_102 {dimension_numbers = #tpu.dot_dimension_numbers<[1], [0], [0], [1], [0, 0, 1, 1], [], []>} : vector<16x32xf32>, vector<32x8xf32>, vector<16x8xf32> -> vector<16x8xf32>
    %c0_103 = arith.constant 0 : index
    %c2_104 = arith.constant 2 : index
    %c0_105 = arith.constant 0 : index
    %c0_106 = arith.constant 0 : index
    %127 = vector.load %arg10[%c0_103, %c2_104, %c0_105, %c0_106] : memref<1x4x1x8xf32, #tpu.memory_space<vmem>>, vector<1x1x1x8xf32>
    %128 = vector.shape_cast %127 : vector<1x1x1x8xf32> to vector<1x8xf32>
    %129 = vector.broadcast %128 : vector<1x8xf32> to vector<16x8xf32>
    %130 = arith.addf %126, %129 : vector<16x8xf32>
    %c0_107 = arith.constant 0 : index
    %c2_108 = arith.constant 2 : index
    %c0_109 = arith.constant 0 : index
    %c0_110 = arith.constant 0 : index
    %131 = vector.load %arg11[%c0_107, %c2_108, %c0_109, %c0_110] : memref<1x4x32x8xf32, #tpu.memory_space<vmem>>, vector<1x1x32x8xf32>
    %132 = vector.shape_cast %131 : vector<1x1x32x8xf32> to vector<32x8xf32>
    %cst_111 = arith.constant dense<0.000000e+00> : vector<16x8xf32>
    %133 = tpu.matmul %4, %132, %cst_111 {dimension_numbers = #tpu.dot_dimension_numbers<[1], [0], [0], [1], [0, 0, 1, 1], [], []>} : vector<16x32xf32>, vector<32x8xf32>, vector<16x8xf32> -> vector<16x8xf32>
    %c0_112 = arith.constant 0 : index
    %c2_113 = arith.constant 2 : index
    %c0_114 = arith.constant 0 : index
    %c0_115 = arith.constant 0 : index
    %134 = vector.load %arg12[%c0_112, %c2_113, %c0_114, %c0_115] : memref<1x4x1x8xf32, #tpu.memory_space<vmem>>, vector<1x1x1x8xf32>
    %135 = vector.shape_cast %134 : vector<1x1x1x8xf32> to vector<1x8xf32>
    %136 = vector.broadcast %135 : vector<1x8xf32> to vector<16x8xf32>
    %137 = arith.addf %133, %136 : vector<16x8xf32>
    %138 = vector.shape_cast %123 : vector<8x8xf32> to vector<1x8x8xf32>
    %139 = vector.shape_cast %130 : vector<16x8xf32> to vector<1x16x8xf32>
    %140 = vector.shape_cast %137 : vector<16x8xf32> to vector<1x16x8xf32>
    "tpu.trace_start"() <{level = 10 : i32, message = "bqd,bkd->bqk"}> : () -> ()
    %cst_116 = arith.constant dense<0.000000e+00> : vector<1x8x16xf32>
    %141 = tpu.matmul %138, %139, %cst_116 {dimension_numbers = #tpu.dot_dimension_numbers<[2], [2], [1], [1], [0, 0, 0, 1, 1, 1], [0], [0]>} : vector<1x8x8xf32>, vector<1x16x8xf32>, vector<1x8x16xf32> -> vector<1x8x16xf32>
    "tpu.trace_stop"() : () -> ()
    %cst_117 = arith.constant 0.353553385 : f32
    %142 = vector.broadcast %cst_117 : f32 to vector<1x8x16xf32>
    %143 = arith.mulf %141, %142 : vector<1x8x16xf32>
    %144 = vector.broadcast %5 : vector<1x1x16xf32> to vector<1x8x16xf32>
    %145 = arith.addf %143, %144 : vector<1x8x16xf32>
    %cst_118 = arith.constant dense<0xFF800000> : vector<1x8xf32>
    %146 = vector.multi_reduction <maximumf>, %145, %cst_118 [2] : vector<1x8x16xf32> to vector<1x8xf32>
    %147 = vector.shape_cast %146 : vector<1x8xf32> to vector<1x8x1xf32>
    %148 = vector.broadcast %147 : vector<1x8x1xf32> to vector<1x8x16xf32>
    %149 = arith.subf %145, %148 : vector<1x8x16xf32>
    %150 = math.exp %149 : vector<1x8x16xf32>
    %cst_119 = arith.constant dense<0.000000e+00> : vector<1x8xf32>
    %151 = vector.multi_reduction <add>, %150, %cst_119 [2] : vector<1x8x16xf32> to vector<1x8xf32>
    %152 = vector.shape_cast %151 : vector<1x8xf32> to vector<1x8x1xf32>
    %153 = vector.broadcast %152 : vector<1x8x1xf32> to vector<1x8x16xf32>
    %154 = arith.divf %150, %153 : vector<1x8x16xf32>
    "tpu.trace_start"() <{level = 10 : i32, message = "bqk,bkd->bqd"}> : () -> ()
    %cst_120 = arith.constant dense<0.000000e+00> : vector<1x8x8xf32>
    %155 = tpu.matmul %154, %140, %cst_120 {dimension_numbers = #tpu.dot_dimension_numbers<[2], [1], [1], [2], [0, 0, 0, 1, 1, 2], [0], [0]>} : vector<1x8x16xf32>, vector<1x16x8xf32>, vector<1x8x8xf32> -> vector<1x8x8xf32>
    "tpu.trace_stop"() : () -> ()
    %156 = vector.shape_cast %155 : vector<1x8x8xf32> to vector<8x8xf32>
    %c0_121 = arith.constant 0 : index
    %c2_122 = arith.constant 2 : index
    %c0_123 = arith.constant 0 : index
    %c0_124 = arith.constant 0 : index
    %157 = vector.load %arg13[%c0_121, %c2_122, %c0_123, %c0_124] : memref<1x4x8x32xf32, #tpu.memory_space<vmem>>, vector<1x1x8x32xf32>
    %158 = vector.shape_cast %157 : vector<1x1x8x32xf32> to vector<8x32xf32>
    %cst_125 = arith.constant dense<0.000000e+00> : vector<8x32xf32>
    %159 = tpu.matmul %156, %158, %cst_125 {dimension_numbers = #tpu.dot_dimension_numbers<[1], [0], [0], [1], [0, 0, 1, 1], [], []>} : vector<8x8xf32>, vector<8x32xf32>, vector<8x32xf32> -> vector<8x32xf32>
    %160 = arith.addf %116, %159 : vector<8x32xf32>
    %c0_126 = arith.constant 0 : index
    %c3 = arith.constant 3 : index
    %c0_127 = arith.constant 0 : index
    %c0_128 = arith.constant 0 : index
    %161 = vector.load %arg7[%c0_126, %c3, %c0_127, %c0_128] : memref<1x4x32x8xf32, #tpu.memory_space<vmem>>, vector<1x1x32x8xf32>
    %162 = vector.shape_cast %161 : vector<1x1x32x8xf32> to vector<32x8xf32>
    %cst_129 = arith.constant dense<0.000000e+00> : vector<8x8xf32>
    %163 = tpu.matmul %29, %162, %cst_129 {dimension_numbers = #tpu.dot_dimension_numbers<[1], [0], [0], [1], [0, 0, 1, 1], [], []>} : vector<8x32xf32>, vector<32x8xf32>, vector<8x8xf32> -> vector<8x8xf32>
    %c0_130 = arith.constant 0 : index
    %c3_131 = arith.constant 3 : index
    %c0_132 = arith.constant 0 : index
    %c0_133 = arith.constant 0 : index
    %164 = vector.load %arg8[%c0_130, %c3_131, %c0_132, %c0_133] : memref<1x4x1x8xf32, #tpu.memory_space<vmem>>, vector<1x1x1x8xf32>
    %165 = vector.shape_cast %164 : vector<1x1x1x8xf32> to vector<1x8xf32>
    %166 = vector.broadcast %165 : vector<1x8xf32> to vector<8x8xf32>
    %167 = arith.addf %163, %166 : vector<8x8xf32>
    %c0_134 = arith.constant 0 : index
    %c3_135 = arith.constant 3 : index
    %c0_136 = arith.constant 0 : index
    %c0_137 = arith.constant 0 : index
    %168 = vector.load %arg9[%c0_134, %c3_135, %c0_136, %c0_137] : memref<1x4x32x8xf32, #tpu.memory_space<vmem>>, vector<1x1x32x8xf32>
    %169 = vector.shape_cast %168 : vector<1x1x32x8xf32> to vector<32x8xf32>
    %cst_138 = arith.constant dense<0.000000e+00> : vector<16x8xf32>
    %170 = tpu.matmul %4, %169, %cst_138 {dimension_numbers = #tpu.dot_dimension_numbers<[1], [0], [0], [1], [0, 0, 1, 1], [], []>} : vector<16x32xf32>, vector<32x8xf32>, vector<16x8xf32> -> vector<16x8xf32>
    %c0_139 = arith.constant 0 : index
    %c3_140 = arith.constant 3 : index
    %c0_141 = arith.constant 0 : index
    %c0_142 = arith.constant 0 : index
    %171 = vector.load %arg10[%c0_139, %c3_140, %c0_141, %c0_142] : memref<1x4x1x8xf32, #tpu.memory_space<vmem>>, vector<1x1x1x8xf32>
    %172 = vector.shape_cast %171 : vector<1x1x1x8xf32> to vector<1x8xf32>
    %173 = vector.broadcast %172 : vector<1x8xf32> to vector<16x8xf32>
    %174 = arith.addf %170, %173 : vector<16x8xf32>
    %c0_143 = arith.constant 0 : index
    %c3_144 = arith.constant 3 : index
    %c0_145 = arith.constant 0 : index
    %c0_146 = arith.constant 0 : index
    %175 = vector.load %arg11[%c0_143, %c3_144, %c0_145, %c0_146] : memref<1x4x32x8xf32, #tpu.memory_space<vmem>>, vector<1x1x32x8xf32>
    %176 = vector.shape_cast %175 : vector<1x1x32x8xf32> to vector<32x8xf32>
    %cst_147 = arith.constant dense<0.000000e+00> : vector<16x8xf32>
    %177 = tpu.matmul %4, %176, %cst_147 {dimension_numbers = #tpu.dot_dimension_numbers<[1], [0], [0], [1], [0, 0, 1, 1], [], []>} : vector<16x32xf32>, vector<32x8xf32>, vector<16x8xf32> -> vector<16x8xf32>
    %c0_148 = arith.constant 0 : index
    %c3_149 = arith.constant 3 : index
    %c0_150 = arith.constant 0 : index
    %c0_151 = arith.constant 0 : index
    %178 = vector.load %arg12[%c0_148, %c3_149, %c0_150, %c0_151] : memref<1x4x1x8xf32, #tpu.memory_space<vmem>>, vector<1x1x1x8xf32>
    %179 = vector.shape_cast %178 : vector<1x1x1x8xf32> to vector<1x8xf32>
    %180 = vector.broadcast %179 : vector<1x8xf32> to vector<16x8xf32>
    %181 = arith.addf %177, %180 : vector<16x8xf32>
    %182 = vector.shape_cast %167 : vector<8x8xf32> to vector<1x8x8xf32>
    %183 = vector.shape_cast %174 : vector<16x8xf32> to vector<1x16x8xf32>
    %184 = vector.shape_cast %181 : vector<16x8xf32> to vector<1x16x8xf32>
    "tpu.trace_start"() <{level = 10 : i32, message = "bqd,bkd->bqk"}> : () -> ()
    %cst_152 = arith.constant dense<0.000000e+00> : vector<1x8x16xf32>
    %185 = tpu.matmul %182, %183, %cst_152 {dimension_numbers = #tpu.dot_dimension_numbers<[2], [2], [1], [1], [0, 0, 0, 1, 1, 1], [0], [0]>} : vector<1x8x8xf32>, vector<1x16x8xf32>, vector<1x8x16xf32> -> vector<1x8x16xf32>
    "tpu.trace_stop"() : () -> ()
    %cst_153 = arith.constant 0.353553385 : f32
    %186 = vector.broadcast %cst_153 : f32 to vector<1x8x16xf32>
    %187 = arith.mulf %185, %186 : vector<1x8x16xf32>
    %188 = vector.broadcast %5 : vector<1x1x16xf32> to vector<1x8x16xf32>
    %189 = arith.addf %187, %188 : vector<1x8x16xf32>
    %cst_154 = arith.constant dense<0xFF800000> : vector<1x8xf32>
    %190 = vector.multi_reduction <maximumf>, %189, %cst_154 [2] : vector<1x8x16xf32> to vector<1x8xf32>
    %191 = vector.shape_cast %190 : vector<1x8xf32> to vector<1x8x1xf32>
    %192 = vector.broadcast %191 : vector<1x8x1xf32> to vector<1x8x16xf32>
    %193 = arith.subf %189, %192 : vector<1x8x16xf32>
    %194 = math.exp %193 : vector<1x8x16xf32>
    %cst_155 = arith.constant dense<0.000000e+00> : vector<1x8xf32>
    %195 = vector.multi_reduction <add>, %194, %cst_155 [2] : vector<1x8x16xf32> to vector<1x8xf32>
    %196 = vector.shape_cast %195 : vector<1x8xf32> to vector<1x8x1xf32>
    %197 = vector.broadcast %196 : vector<1x8x1xf32> to vector<1x8x16xf32>
    %198 = arith.divf %194, %197 : vector<1x8x16xf32>
    "tpu.trace_start"() <{level = 10 : i32, message = "bqk,bkd->bqd"}> : () -> ()
    %cst_156 = arith.constant dense<0.000000e+00> : vector<1x8x8xf32>
    %199 = tpu.matmul %198, %184, %cst_156 {dimension_numbers = #tpu.dot_dimension_numbers<[2], [1], [1], [2], [0, 0, 0, 1, 1, 2], [0], [0]>} : vector<1x8x16xf32>, vector<1x16x8xf32>, vector<1x8x8xf32> -> vector<1x8x8xf32>
    "tpu.trace_stop"() : () -> ()
    %200 = vector.shape_cast %199 : vector<1x8x8xf32> to vector<8x8xf32>
    %c0_157 = arith.constant 0 : index
    %c3_158 = arith.constant 3 : index
    %c0_159 = arith.constant 0 : index
    %c0_160 = arith.constant 0 : index
    %201 = vector.load %arg13[%c0_157, %c3_158, %c0_159, %c0_160] : memref<1x4x8x32xf32, #tpu.memory_space<vmem>>, vector<1x1x8x32xf32>
    %202 = vector.shape_cast %201 : vector<1x1x8x32xf32> to vector<8x32xf32>
    %cst_161 = arith.constant dense<0.000000e+00> : vector<8x32xf32>
    %203 = tpu.matmul %200, %202, %cst_161 {dimension_numbers = #tpu.dot_dimension_numbers<[1], [0], [0], [1], [0, 0, 1, 1], [], []>} : vector<8x8xf32>, vector<8x32xf32>, vector<8x32xf32> -> vector<8x32xf32>
    %204 = arith.addf %160, %203 : vector<8x32xf32>
    %c0_162 = arith.constant 0 : index
    %c0_163 = arith.constant 0 : index
    %c0_164 = arith.constant 0 : index
    %205 = vector.load %arg14[%c0_162, %c0_163, %c0_164] : memref<1x1x32xf32, #tpu.memory_space<vmem>>, vector<1x1x32xf32>
    %206 = vector.shape_cast %205 : vector<1x1x32xf32> to vector<1x32xf32>
    %207 = vector.broadcast %206 : vector<1x32xf32> to vector<8x32xf32>
    %208 = arith.addf %204, %207 : vector<8x32xf32>
    %209 = arith.addf %208, %3 : vector<8x32xf32>
    %c0_165 = arith.constant 0 : index
    %c0_166 = arith.constant 0 : index
    %c0_167 = arith.constant 0 : index
    %210 = vector.load %arg15[%c0_165, %c0_166, %c0_167] : memref<1x1x32xf32, #tpu.memory_space<vmem>>, vector<1x1x32xf32>
    %211 = vector.shape_cast %210 : vector<1x1x32xf32> to vector<1x32xf32>
    %c0_168 = arith.constant 0 : index
    %c0_169 = arith.constant 0 : index
    %c0_170 = arith.constant 0 : index
    %212 = vector.load %arg16[%c0_168, %c0_169, %c0_170] : memref<1x1x32xf32, #tpu.memory_space<vmem>>, vector<1x1x32xf32>
    %213 = vector.shape_cast %212 : vector<1x1x32xf32> to vector<1x32xf32>
    %cst_171 = arith.constant dense<0.000000e+00> : vector<8xf32>
    %214 = vector.multi_reduction <add>, %209, %cst_171 [1] : vector<8x32xf32> to vector<8xf32>
    %215 = vector.shape_cast %214 : vector<8xf32> to vector<8x1xf32>
    %cst_172 = arith.constant 3.200000e+01 : f32
    %216 = vector.broadcast %cst_172 : f32 to vector<8x1xf32>
    %217 = arith.divf %215, %216 : vector<8x1xf32>
    %218 = vector.broadcast %217 : vector<8x1xf32> to vector<8x32xf32>
    %219 = arith.subf %209, %218 : vector<8x32xf32>
    %220 = arith.mulf %219, %219 : vector<8x32xf32>
    %cst_173 = arith.constant dense<0.000000e+00> : vector<8xf32>
    %221 = vector.multi_reduction <add>, %220, %cst_173 [1] : vector<8x32xf32> to vector<8xf32>
    %222 = vector.shape_cast %221 : vector<8xf32> to vector<8x1xf32>
    %cst_174 = arith.constant 3.100000e+01 : f32
    %223 = vector.broadcast %cst_174 : f32 to vector<8x1xf32>
    %224 = arith.divf %222, %223 : vector<8x1xf32>
    %225 = vector.broadcast %211 : vector<1x32xf32> to vector<8x32xf32>
    %226 = arith.mulf %225, %219 : vector<8x32xf32>
    %227 = math.sqrt %224 : vector<8x1xf32>
    %cst_175 = arith.constant 9.99999997E-7 : f32
    %228 = vector.broadcast %cst_175 : f32 to vector<8x1xf32>
    %229 = arith.addf %227, %228 : vector<8x1xf32>
    %230 = vector.broadcast %229 : vector<8x1xf32> to vector<8x32xf32>
    %231 = arith.divf %226, %230 : vector<8x32xf32>
    %232 = vector.broadcast %213 : vector<1x32xf32> to vector<8x32xf32>
    %233 = arith.addf %231, %232 : vector<8x32xf32>
    %c0_176 = arith.constant 0 : index
    %c0_177 = arith.constant 0 : index
    %c0_178 = arith.constant 0 : index
    %234 = vector.load %arg17[%c0_176, %c0_177, %c0_178] : memref<1x32x64xf32, #tpu.memory_space<vmem>>, vector<1x32x64xf32>
    %235 = vector.shape_cast %234 : vector<1x32x64xf32> to vector<32x64xf32>
    %cst_179 = arith.constant dense<0.000000e+00> : vector<8x64xf32>
    %236 = tpu.matmul %233, %235, %cst_179 {dimension_numbers = #tpu.dot_dimension_numbers<[1], [0], [0], [1], [0, 0, 1, 1], [], []>} : vector<8x32xf32>, vector<32x64xf32>, vector<8x64xf32> -> vector<8x64xf32>
    %c0_180 = arith.constant 0 : index
    %c0_181 = arith.constant 0 : index
    %c0_182 = arith.constant 0 : index
    %237 = vector.load %arg18[%c0_180, %c0_181, %c0_182] : memref<1x1x64xf32, #tpu.memory_space<vmem>>, vector<1x1x64xf32>
    %238 = vector.shape_cast %237 : vector<1x1x64xf32> to vector<1x64xf32>
    %239 = vector.broadcast %238 : vector<1x64xf32> to vector<8x64xf32>
    %240 = arith.addf %236, %239 : vector<8x64xf32>
    %cst_183 = arith.constant 0.000000e+00 : f32
    %241 = vector.broadcast %cst_183 : f32 to vector<8x64xf32>
    %242 = arith.maximumf %240, %241 : vector<8x64xf32>
    %c0_184 = arith.constant 0 : index
    %c0_185 = arith.constant 0 : index
    %c0_186 = arith.constant 0 : index
    %243 = vector.load %arg19[%c0_184, %c0_185, %c0_186] : memref<1x64x32xf32, #tpu.memory_space<vmem>>, vector<1x64x32xf32>
    %244 = vector.shape_cast %243 : vector<1x64x32xf32> to vector<64x32xf32>
    %cst_187 = arith.constant dense<0.000000e+00> : vector<8x32xf32>
    %245 = tpu.matmul %242, %244, %cst_187 {dimension_numbers = #tpu.dot_dimension_numbers<[1], [0], [0], [1], [0, 0, 1, 1], [], []>} : vector<8x64xf32>, vector<64x32xf32>, vector<8x32xf32> -> vector<8x32xf32>
    %c0_188 = arith.constant 0 : index
    %c0_189 = arith.constant 0 : index
    %c0_190 = arith.constant 0 : index
    %246 = vector.load %arg20[%c0_188, %c0_189, %c0_190] : memref<1x1x32xf32, #tpu.memory_space<vmem>>, vector<1x1x32xf32>
    %247 = vector.shape_cast %246 : vector<1x1x32xf32> to vector<1x32xf32>
    %248 = vector.broadcast %247 : vector<1x32xf32> to vector<8x32xf32>
    %249 = arith.addf %245, %248 : vector<8x32xf32>
    %250 = arith.addf %249, %209 : vector<8x32xf32>
    %c1_i32 = arith.constant 1 : i32
    %251 = arith.cmpi eq, %arg1, %c1_i32 : i32
    %252 = arith.extui %251 : i1 to i32
    %c0_i32_191 = arith.constant 0 : i32
    %253 = arith.cmpi ne, %252, %c0_i32_191 : i32
    scf.if %253 {
      %c0_194 = arith.constant 0 : index
      %c0_195 = arith.constant 0 : index
      %257 = vector.load %arg21[%c0_194, %c0_195] : memref<1x32xf32, #tpu.memory_space<vmem>>, vector<1x32xf32>
      %c0_196 = arith.constant 0 : index
      %c0_197 = arith.constant 0 : index
      %258 = vector.load %arg22[%c0_196, %c0_197] : memref<1x32xf32, #tpu.memory_space<vmem>>, vector<1x32xf32>
      %cst_198 = arith.constant dense<0.000000e+00> : vector<8xf32>
      %259 = vector.multi_reduction <add>, %250, %cst_198 [1] : vector<8x32xf32> to vector<8xf32>
      %260 = vector.shape_cast %259 : vector<8xf32> to vector<8x1xf32>
      %cst_199 = arith.constant 3.200000e+01 : f32
      %261 = vector.broadcast %cst_199 : f32 to vector<8x1xf32>
      %262 = arith.divf %260, %261 : vector<8x1xf32>
      %263 = vector.broadcast %262 : vector<8x1xf32> to vector<8x32xf32>
      %264 = arith.subf %250, %263 : vector<8x32xf32>
      %265 = arith.mulf %264, %264 : vector<8x32xf32>
      %cst_200 = arith.constant dense<0.000000e+00> : vector<8xf32>
      %266 = vector.multi_reduction <add>, %265, %cst_200 [1] : vector<8x32xf32> to vector<8xf32>
      %267 = vector.shape_cast %266 : vector<8xf32> to vector<8x1xf32>
      %cst_201 = arith.constant 3.100000e+01 : f32
      %268 = vector.broadcast %cst_201 : f32 to vector<8x1xf32>
      %269 = arith.divf %267, %268 : vector<8x1xf32>
      %270 = vector.broadcast %257 : vector<1x32xf32> to vector<8x32xf32>
      %271 = arith.mulf %270, %264 : vector<8x32xf32>
      %272 = math.sqrt %269 : vector<8x1xf32>
      %cst_202 = arith.constant 9.99999997E-7 : f32
      %273 = vector.broadcast %cst_202 : f32 to vector<8x1xf32>
      %274 = arith.addf %272, %273 : vector<8x1xf32>
      %275 = vector.broadcast %274 : vector<8x1xf32> to vector<8x32xf32>
      %276 = arith.divf %271, %275 : vector<8x32xf32>
      %277 = vector.broadcast %258 : vector<1x32xf32> to vector<8x32xf32>
      %278 = arith.addf %276, %277 : vector<8x32xf32>
      %c0_203 = arith.constant 0 : index
      %c0_204 = arith.constant 0 : index
      %279 = vector.load %arg23[%c0_203, %c0_204] : memref<8x32xf32, #tpu.memory_space<vmem>>, vector<8x32xf32>
      tpu.vector_store %arg23[%c0_203, %c0_204], %278 {strides = array<i32>} : memref<8x32xf32, #tpu.memory_space<vmem>>, vector<8x32xf32>,
    } else {
    }
    %c1_i32_192 = arith.constant 1 : i32
    %254 = arith.cmpi slt, %arg1, %c1_i32_192 : i32
    %255 = arith.extui %254 : i1 to i32
    %c0_i32_193 = arith.constant 0 : i32
    %256 = arith.cmpi ne, %255, %c0_i32_193 : i32
    scf.if %256 {
      %c0_194 = arith.constant 0 : index
      %c0_195 = arith.constant 0 : index
      %257 = vector.load %arg23[%c0_194, %c0_195] : memref<8x32xf32, #tpu.memory_space<vmem>>, vector<8x32xf32>
      tpu.vector_store %arg23[%c0_194, %c0_195], %250 {strides = array<i32>} : memref<8x32xf32, #tpu.memory_space<vmem>>, vector<8x32xf32>,
    } else {
    }
    return
  }
  func.func @transform_0(%arg0: i32, %arg1: i32) -> (i32, i32) {
    %c0_i32 = arith.constant 0 : i32
    %c0_i32_0 = arith.constant 0 : i32
    return %arg0, %c0_i32 : i32, i32
  }
  func.func @transform_1(%arg0: i32, %arg1: i32) -> (i32, i32) {
    %c0_i32 = arith.constant 0 : i32
    %c0_i32_0 = arith.constant 0 : i32
    return %arg0, %c0_i32 : i32, i32
  }
  func.func @transform_2(%arg0: i32, %arg1: i32) -> (i32, i32, i32) {
    %c0_i32 = arith.constant 0 : i32
    %c0_i32_0 = arith.constant 0 : i32
    %c0_i32_1 = arith.constant 0 : i32
    return %arg0, %c0_i32, %c0_i32_0 : i32, i32, i32
  }
  func.func @transform_3(%arg0: i32, %arg1: i32) -> (i32, i32, i32) {
    %c0_i32 = arith.constant 0 : i32
    %c0_i32_0 = arith.constant 0 : i32
    %c0_i32_1 = arith.constant 0 : i32
    return %arg1, %c0_i32, %c0_i32_0 : i32, i32, i32
  }
  func.func @transform_4(%arg0: i32, %arg1: i32) -> (i32, i32, i32) {
    %c0_i32 = arith.constant 0 : i32
    %c0_i32_0 = arith.constant 0 : i32
    %c0_i32_1 = arith.constant 0 : i32
    return %arg1, %c0_i32, %c0_i32_0 : i32, i32, i32
  }
  func.func @transform_5(%arg0: i32, %arg1: i32) -> (i32, i32, i32, i32) {
    %c0_i32 = arith.constant 0 : i32
    %c0_i32_0 = arith.constant 0 : i32
    %c0_i32_1 = arith.constant 0 : i32
    %c0_i32_2 = arith.constant 0 : i32
    return %arg1, %c0_i32, %c0_i32_0, %c0_i32_1 : i32, i32, i32, i32
  }
  func.func @transform_6(%arg0: i32, %arg1: i32) -> (i32, i32, i32, i32) {
    %c0_i32 = arith.constant 0 : i32
    %c0_i32_0 = arith.constant 0 : i32
    %c0_i32_1 = arith.constant 0 : i32
    %c0_i32_2 = arith.constant 0 : i32
    return %arg1, %c0_i32, %c0_i32_0, %c0_i32_1 : i32, i32, i32, i32
  }
  func.func @transform_7(%arg0: i32, %arg1: i32) -> (i32, i32, i32, i32) {
    %c0_i32 = arith.constant 0 : i32
    %c0_i32_0 = arith.constant 0 : i32
    %c0_i32_1 = arith.constant 0 : i32
    %c0_i32_2 = arith.constant 0 : i32
    return %arg1, %c0_i32, %c0_i32_0, %c0_i32_1 : i32, i32, i32, i32
  }
  func.func @transform_8(%arg0: i32, %arg1: i32) -> (i32, i32, i32, i32) {
    %c0_i32 = arith.constant 0 : i32
    %c0_i32_0 = arith.constant 0 : i32
    %c0_i32_1 = arith.constant 0 : i32
    %c0_i32_2 = arith.constant 0 : i32
    return %arg1, %c0_i32, %c0_i32_0, %c0_i32_1 : i32, i32, i32, i32
  }
  func.func @transform_9(%arg0: i32, %arg1: i32) -> (i32, i32, i32, i32) {
    %c0_i32 = arith.constant 0 : i32
    %c0_i32_0 = arith.constant 0 : i32
    %c0_i32_1 = arith.constant 0 : i32
    %c0_i32_2 = arith.constant 0 : i32
    return %arg1, %c0_i32, %c0_i32_0, %c0_i32_1 : i32, i32, i32, i32
  }
  func.func @transform_10(%arg0: i32, %arg1: i32) -> (i32, i32, i32, i32) {
    %c0_i32 = arith.constant 0 : i32
    %c0_i32_0 = arith.constant 0 : i32
    %c0_i32_1 = arith.constant 0 : i32
    %c0_i32_2 = arith.constant 0 : i32
    return %arg1, %c0_i32, %c0_i32_0, %c0_i32_1 : i32, i32, i32, i32
  }
  func.func @transform_11(%arg0: i32, %arg1: i32) -> (i32, i32, i32, i32) {
    %c0_i32 = arith.constant 0 : i32
    %c0_i32_0 = arith.constant 0 : i32
    %c0_i32_1 = arith.constant 0 : i32
    %c0_i32_2 = arith.constant 0 : i32
    return %arg1, %c0_i32, %c0_i32_0, %c0_i32_1 : i32, i32, i32, i32
  }
  func.func @transform_12(%arg0: i32, %arg1: i32) -> (i32, i32, i32) {
    %c0_i32 = arith.constant 0 : i32
    %c0_i32_0 = arith.constant 0 : i32
    %c0_i32_1 = arith.constant 0 : i32
    return %arg1, %c0_i32, %c0_i32_0 : i32, i32, i32
  }
  func.func @transform_13(%arg0: i32, %arg1: i32) -> (i32, i32, i32) {
    %c0_i32 = arith.constant 0 : i32
    %c0_i32_0 = arith.constant 0 : i32
    %c0_i32_1 = arith.constant 0 : i32
    return %arg1, %c0_i32, %c0_i32_0 : i32, i32, i32
  }
  func.func @transform_14(%arg0: i32, %arg1: i32) -> (i32, i32, i32) {
    %c0_i32 = arith.constant 0 : i32
    %c0_i32_0 = arith.constant 0 : i32
    %c0_i32_1 = arith.constant 0 : i32
    return %arg1, %c0_i32, %c0_i32_0 : i32, i32, i32
  }
  func.func @transform_15(%arg0: i32, %arg1: i32) -> (i32, i32, i32) {
    %c0_i32 = arith.constant 0 : i32
    %c0_i32_0 = arith.constant 0 : i32
    %c0_i32_1 = arith.constant 0 : i32
    return %arg1, %c0_i32, %c0_i32_0 : i32, i32, i32
  }
  func.func @transform_16(%arg0: i32, %arg1: i32) -> (i32, i32, i32) {
    %c0_i32 = arith.constant 0 : i32
    %c0_i32_0 = arith.constant 0 : i32
    %c0_i32_1 = arith.constant 0 : i32
    return %arg1, %c0_i32, %c0_i32_0 : i32, i32, i32
  }
  func.func @transform_17(%arg0: i32, %arg1: i32) -> (i32, i32, i32) {
    %c0_i32 = arith.constant 0 : i32
    %c0_i32_0 = arith.constant 0 : i32
    %c0_i32_1 = arith.constant 0 : i32
    return %arg1, %c0_i32, %c0_i32_0 : i32, i32, i32
  }
  func.func @transform_18(%arg0: i32, %arg1: i32) -> (i32, i32, i32) {
    %c0_i32 = arith.constant 0 : i32
    %c0_i32_0 = arith.constant 0 : i32
    %c0_i32_1 = arith.constant 0 : i32
    return %arg1, %c0_i32, %c0_i32_0 : i32, i32, i32
  }
  func.func @transform_19(%arg0: i32, %arg1: i32) -> (i32, i32) {
    %c0_i32 = arith.constant 0 : i32
    %c0_i32_0 = arith.constant 0 : i32
    %c0_i32_1 = arith.constant 0 : i32
    return %c0_i32, %c0_i32_0 : i32, i32
  }
  func.func @transform_20(%arg0: i32, %arg1: i32) -> (i32, i32) {
    %c0_i32 = arith.constant 0 : i32
    %c0_i32_0 = arith.constant 0 : i32
    %c0_i32_1 = arith.constant 0 : i32
    return %c0_i32, %c0_i32_0 : i32, i32
  }
  func.func @transform_21(%arg0: i32, %arg1: i32) -> (i32, i32) {
    %c0_i32 = arith.constant 0 : i32
    %c0_i32_0 = arith.constant 0 : i32
    return %arg0, %c0_i32 : i32, i32
  }
}

</mosaic_0001>

<bundles_post_ra>
// kernel: tpu_custom_call.1
= control target key start
LH: loop header
LB: loop body
LE: loop exit
PB: predicated region body
PF: predicated region fallthrough
CT: control target
= control target key end

     0   :  { %s5053_s0 = inlined_call_operand.vmem [shape: f32[16,32], index: 0, kind: input, shape index: {}]   ;;  %s5054_s1 = inlined_call_operand.vmem [shape: f32[32,32], index: 1, kind: input, shape index: {}]   ;;  %s5055_s2 = inlined_call_operand.vmem [shape: f32[2,1,16], index: 2, kind: input, shape index: {}]   ;;  %s5056_s3 = inlined_call_operand.vmem [shape: f32[2,1,32], index: 3, kind: input, shape index: {}]   ;;  %s5057_s4 = inlined_call_operand.vmem [shape: f32[2,1,32], index: 4, kind: input, shape index: {}]   ;;  %s5058_s5 = inlined_call_operand.vmem [shape: f32[2,4,32,8], index: 5, kind: input, shape index: {}]   ;;  %s5059_s6 = inlined_call_operand.vmem [shape: f32[2,4,1,8], index: 6, kind: input, shape index: {}]   ;;  %s5060_s7 = inlined_call_operand.vmem [shape: f32[2,4,32,8], index: 7, kind: input, shape index: {}]   ;;  %s5061_s8 = inlined_call_operand.vmem [shape: f32[2,4,1,8], index: 8, kind: input, shape index: {}]   ;;  %s5062_s9 = inlined_call_operand.vmem [shape: f32[2,4,32,8], index: 9, kind: input, shape index: {}]   ;;  %s5063_s10 = inlined_call_operand.vmem [shape: f32[2,4,1,8], index: 10, kind: input, shape index: {}]   ;;  %s5064_s11 = inlined_call_operand.vmem [shape: f32[2,4,8,32], index: 11, kind: input, shape index: {}]   ;;  %s5065_s12 = inlined_call_operand.vmem [shape: f32[2,1,32], index: 12, kind: input, shape index: {}]   ;;  %s5066_s13 = inlined_call_operand.vmem [shape: f32[2,1,32], index: 13, kind: input, shape index: {}]   ;;  %s5067_s14 = inlined_call_operand.vmem [shape: f32[2,1,32], index: 14, kind: input, shape index: {}]   ;;  %s5068_s15 = inlined_call_operand.vmem [shape: f32[2,32,64], index: 15, kind: input, shape index: {}]   ;;  %s5069_s16 = inlined_call_operand.vmem [shape: f32[2,1,64], index: 16, kind: input, shape index: {}]   ;;  %s5070_s17 = inlined_call_operand.vmem [shape: f32[2,64,32], index: 17, kind: input, shape index: {}]   ;;  %s5071_s18 = inlined_call_operand.vmem [shape: f32[2,1,32], index: 18, kind: input, shape index: {}]   ;;  %s5072_s19 = inlined_call_operand.vmem [shape: f32[1,32], index: 19, kind: input, shape index: {}]   ;;  %s5073_s20 = inlined_call_operand.vmem [shape: f32[1,32], index: 20, kind: input, shape index: {}]   ;;  %s5074_s21 = inlined_call_operand.hbm [shape: f32[16,32], index: 21, kind: output, shape index: {}]  }
   0x1   :  { %5093 = sst [smem:[#allocation21_spill]] %s5053_s0 }
   0x2   :  { %5094 = sst [smem:[#allocation22_spill]] %s5054_s1 }
   0x3   :  { %5095 = sst [smem:[#allocation23_spill]] %s5055_s2 }
   0x4   :  { %5096 = sst [smem:[#allocation24_spill]] %s5056_s3 }
   0x5   :  { %5097 = sst [smem:[#allocation25_spill]] %s5057_s4 }
   0x6   :  { %5098 = sst [smem:[#allocation26_spill]] %s5058_s5 }
   0x7   :  { %5099 = sst [smem:[#allocation27_spill]] %s5059_s6 }
   0x8   :  { %5100 = sst [smem:[#allocation28_spill]] %s5060_s7 }
   0x9   :  { %5101 = sst [smem:[#allocation29_spill]] %s5061_s8 }
   0xa   :  { %5102 = sst [smem:[#allocation30_spill]] %s5062_s9 }
   0xb   :  { %5103 = sst [smem:[#allocation31_spill]] %s5063_s10 }
   0xc   :  { %5104 = sst [smem:[#allocation32_spill]] %s5064_s11 }
   0xd   :  { %5105 = sst [smem:[#allocation33_spill]] %s5065_s12 }
   0xe   :  { %5106 = sst [smem:[#allocation34_spill]] %s5068_s15 }
   0xf   :  { %5107 = sst [smem:[#allocation35_spill]] %s5069_s16 }
  0x10   :  { %5108 = sst [smem:[#allocation36_spill]] %s5070_s17 }
  0x11   :  { %5109 = sst [smem:[#allocation37_spill]] %s5071_s18 }
  0x12   :  { %5110 = sst [smem:[#allocation38_spill]] %s5072_s19 }
  0x13   :  { %5111 = sst [smem:[#allocation39_spill]] %s5073_s20 }
  0x14   :  { %5112 = sst [smem:[#allocation40_spill]] %s5074_s21 }
  0x15   :  { %26 = vsyncpa [#allocation3], 0 }
  0x16   :  { %28 = vsyncpa [#allocation3 + $0x1], 0  ;;  %s4516_s2 = smov 0   ;;  %s4518_s25 = smov 0  }
  0x17   :  { %s4520_s26 = smov 0   ;;  %s4522_s27 = smov 0  }
  0x18   :  { %s4524_s3 = smov 0   ;;  %s4526_s28 = smov 0  }
  0x19   :  { %s4528_s29 = smov 0   ;;  %s4530_s0 = smov 0  }
  0x1a LB: > { %5113 = sst [smem:[#allocation5_spill]] %s4372_s2  ;;  %s3569_s4 = sadd.s32 4294967295, %s4400_s0   ;;  %s4400_s0 = sphi %s4530_s0, %s34_s0   ;;  %s4396_s29 = sphi %s4528_s29, %s5181_s29   ;;  %s4392_s28 = sphi %s4526_s28, %s5180_s28   ;;  %s4388_s3 = sphi %s4524_s3, %s5179_s3   ;;  %s4384_s27 = sphi %s4522_s27, %s5178_s27   ;;  %s4380_s26 = sphi %s4520_s26, %s5177_s26   ;;  %s4376_s25 = sphi %s4518_s25, %s5176_s25   ;;  %s4372_s2 = sphi %s4516_s2, %s5175_s2  }
  0x1b   : > { %5114 = sst [smem:[#allocation6_spill]] %s4376_s25  ;;  %s3570_s30 = sadd.s32 4294967294, %s4400_s0  }
  0x1c   : > { %5115 = sst [smem:[#allocation7_spill]] %s4380_s26  ;;  %s43_s5 = sadd.s32 1, %s4392_s28 }
  0x1d   : > { %5116 = sst [smem:[#allocation8_spill]] %s4388_s3  ;;  %p44_p0 = scmp.ge.s32.totalorder %s43_s5, 2 }
  0x1e   : > { %5117 = sst [smem:[#allocation9_spill]] %s4392_s28  ;;  %s46_s22 = sadd.s32 1, %s4396_s29 }
  0x1f   : > { %5118 = sst [smem:[#allocation10_spill]] %s4396_s29  ;;  %p599_p1 = scmp.ne.s32.totalorder %s4380_s26, %s4376_s25 }
  0x20   : > { %5119 = sst [smem:[#allocation11_spill]] %s4400_s0  ;;  %p600_p2 = scmp.eq.s32.totalorder %s3569_s4, 3 }
  0x21   : > { %s5183_s5 = smov (%p44_p0, %s43_s5), 0  ;;  %s5185_s22 = smov (!%p44_p0, %s46_s22), %s4396_s29 }
  0x22   : > { %5120 = sst [smem:[#allocation12_spill]] %s5183_s5  ;;  %p4565_p3 = por %p600_p2, %p599_p1 }
  0x23   : > { %p605_p4 = scmp.ne.s32.totalorder %s4376_s25, %s4372_s2  ;;  %p48_p5 = scmp.ge.s32.totalorder %s5185_s22, 2 }
  0x24   : > { %s5121_s23 = scalar_select %p4565_p3, 1, 0 }
  0x25   : > { %p606_p6 = scmp.eq.s32.totalorder %s3570_s30, 3  ;;  %p3573_p7 = scmp.ge.s32.totalorder %s4400_s0, 1 }
  0x26   : > { %5122 = sst [smem:[#allocation13_spill]] %s5121_s23  ;;  %p763_p8 = scmp.lt.s32.totalorder %s4400_s0, 5 }
  0x27   : > { %s5187_s22 = smov (%p48_p5, %s5185_s22), 0  ;;  %p4575_p9 = por %p606_p6, %p605_p4 }
  0x28   : > { %5123 = sst [smem:[#allocation14_spill]] %s5187_s22  ;;  %p764_p10 = pnand %p3573_p7, %p763_p8 }
  0x29   : > { %s5124_s1 = scalar_select %p4575_p9, 1, 0 }
  0x2a   : > { %s586_s24 = ssub.s32 %s4396_s29, %s5187_s22  ;;  %s589_s4 = sadd.s32 1, %s4380_s26 }
  0x2b   : > { %5125 = sst [smem:[#allocation15_spill]] %s5124_s1  ;;  %p587_p11 = scmp.eq.s32.totalorder %s586_s24, 0 }
  0x2c   : > { %767 = sbr.rel (%p764_p10) target bundleno = 5402 (0x151a), region = 104 }
  0x2d   : > { %s4583_s5 = scalar_select %p587_p11, %s4380_s26, %s589_s4  }
  0x2f   : > { %5126 = sst [smem:[#allocation16_spill]] %s4583_s5 }
  0x33   : > { %s5087_s30 = sand.u32 1, %s4376_s25   ;;  %p893_p12 = scmp.lt.s32.totalorder %s4388_s3, 1 }
  0x34   : > { %s4589_s28 = sshll.u32 %s5087_s30, 3  ;;  %s3576_s1 = sshll.u32 %s4388_s3, 1 }
  0x35   : > { %p898_p13 = scmp.lt.s32.totalorder %s3576_s1, 3  ;;  %s5129_s21 = sld [smem:[#allocation21_spill]] }
  0x36   : > { %s4593_s22 = scalar_select %p893_p12, %s4388_s3, 1 }
  0x37   : > { %s5189_s1 = smov (!%p898_p13, %s3576_s1), 3  ;;  %s5130_s19 = sld [smem:[#allocation22_spill]] }
  0x38   : > { %5127 = sst [smem:[#allocation17_spill]] %s4593_s22  ;;  %s3575_s24 = sshll.u32 %s4593_s22, 3 }
  0x39   : > { %s3577_s20 = sshll.u32 %s5189_s1, 3  ;;  %p906_p0 = scmp.lt.s32.totalorder %s4384_s27, 1 }
  0x3a   : > { %s5133_s30 = sld [smem:[#allocation26_spill]]  ;;  %s5134_s6 = sld [smem:[#allocation27_spill]] }
  0x3b   : > { %s896_s23 = scalar_lea.vmem %s5129_s21, %s3575_s24  ;;  %s5136_s7 = sld [smem:[#allocation28_spill]] }
  0x3c   : > { %s4610_s3 = scalar_select %p906_p0, %s4384_s27, 1 }
  0x3d   : > { %s4606_s18 = scalar_lea.vmem %s5130_s19, %s3577_s20  ;;  %s5137_s8 = sld [smem:[#allocation29_spill]] }
  0x3e   : > { %s3712_s20 = sshll.u32 %s4610_s3, 7  ;;  %s3580_s0 = sshll.u32 %s4610_s3, 2 }
  0x3f   : > { %s5138_s9 = sld [smem:[#allocation30_spill]]  ;;  %s5139_s10 = sld [smem:[#allocation31_spill]] }
  0x40   : > { %s4625_s16 = scalar_lea.vmem %s5133_s30, %s3712_s20  ;;  %s4630_s4 = scalar_lea.vmem %s5134_s6, %s3580_s0 }
  0x41   : > { %5135 = sst [smem:[#allocation18_spill]] %s4630_s4  ;;  %s4635_s2 = scalar_lea.vmem %s5136_s7, %s3712_s20 }
  0x42   : > { %s3715_s6 = sshll.u32 %s4610_s3, 5  ;;  %s5142_s11 = sld [smem:[#allocation32_spill]] }
  0x43   : > { %s4640_s19 = scalar_lea.vmem %s5137_s8, %s3580_s0  ;;  %s952_s21 = scalar_lea.vmem %s5067_s14, %s4610_s3 }
  0x44   : > { %s5145_s15 = sld [smem:[#allocation35_spill]]  ;;  %s3717_s7 = sshll.u32 %s4610_s3, 6 }
  0x45   : > { %s4645_s30 = scalar_lea.vmem %s5138_s9, %s3712_s20  ;;  %s4650_s24 = scalar_lea.vmem %s5139_s10, %s3580_s0 }
  0x46   : > { %5140 = sst [smem:[#allocation19_spill]] %s4650_s24  ;;  %s5144_s9 = sld [smem:[#allocation34_spill]] }
  0x47   : > { %s5147_s20 = sld [smem:[#allocation37_spill]]  ;;  %s4690_s1 = scalar_lea.vmem [#allocation2], %s4589_s28 }
  0x48   : > { %s4660_s29 = scalar_lea.vmem %s5142_s11, %s3715_s6  ;;  %p3593_p1 = scmp.ne.s32.totalorder %s4384_s27, 0 }
  0x49   : > { %5143 = sst [smem:[#allocation20_spill]] %s4660_s29  ;;  %s5146_s29 = sld [smem:[#allocation36_spill]]  ;;  %v973_v0 = vld [vmem:[%s896_s23] sm:$0xff] (!%p3593_p1)  ;;  %vm974_vm0 = vcmask (!%p3593_p1), 261120  }
  0x4a   : > { %s960_s12 = scalar_lea.vmem %s5145_s15, %s4610_s3  ;;  %972 = sbr.rel (%p3593_p1) target bundleno = 81 (0x51), region = 108  ;;  %975 = vst.msk [vmem:[%s4690_s1] sm:$0xff] (!%p3593_p1), %vm974_vm0, %v973_v0 }
  0x4c   : > { %s4673_s10 = scalar_lea.vmem %s5144_s9, %s3715_s6 }
  0x4d   : > { %s968_s5 = scalar_lea.vmem %s5147_s20, %s4610_s3 }
  0x4f   : > { %s4683_s24 = scalar_lea.vmem %s5146_s29, %s3717_s7 }
  0x51 PF: > { %v4695_v1 = vld [vmem:[%s4690_s1] sm:$0xff]  ;;  %vm982_vm1 = vcmask 261120   ;;  %v1105_v11 = vld [vmem:[%s4635_s2 + $0x10] sm:$0xff]  ;;  %v1106_v12 = vld [vmem:[%s4635_s2 + $0x18] sm:$0xff]  ;;  %v4402_v15 = vmov 0.0|0.0   ;;  %vm4403_vm2 = vmmov 0   ;;  %s5162_s6 = scalar_lea.vmem %s5066_s13, %s4610_s3 }
  0x52   : > { %v983_v2 = vsel %vm982_vm1, %v4695_v1, 0.0  ;;  %v1103_v8 = vld [vmem:[%s4635_s2] sm:$0xff]  ;;  %v1104_v9 = vld [vmem:[%s4635_s2 + $0x8] sm:$0xff]  ;;  %v4080_v14 = vpack.c.bf16 %v1106_v12, %v1105_v11  ;;  %4070 = vmatprep.subr.bf16.mxu0 %v4402_v15  ;;  %v1021_v19 = vld [vmem:[%s4625_s16 + $0x10] sm:$0xff]  ;;  %v4404_v21 = vmov 0.0   ;;  %s5148_s11 = sld [smem:[#allocation24_spill]] }
  0x53   : > { %984 = vadd.xlane.f32.xlu0 %v983_v2  ;;  %v4076_v10 = vpack.c.bf16 %v1104_v9, %v1103_v8  ;;  %v4706_v13 = vld [vmem:[%s4606_s18] sm:$0xff]  ;;  %v1020_v17 = vld [vmem:[%s4625_s16 + $0x8] sm:$0xff]  ;;  %v1022_v20 = vld [vmem:[%s4625_s16 + $0x18] sm:$0xff]  ;;  %3840 = vmatprep.mubr.msk.f32.mxu0 %vm4403_vm2, %v4404_v21  ;;  %s5150_s15 = sld [smem:[#allocation25_spill]]  ;;  %s5152_s20 = sld [smem:[#allocation18_spill]]  ;;  %vm1281_vm5 = vcmask 64512  }
  0x54   : > { %3851 = vmatprep.mubr.msk.f32.mxu1 %vm982_vm1, %v4706_v13  ;;  %v1019_v16 = vld [vmem:[%s4625_s16] sm:$0xff]  ;;  %v4718_v22 = vld [vmem:[%s4606_s18 + $0x8] sm:$0xff]  ;;  %v4074_v23 = vpack.c.bf16 %v1022_v20, %v1021_v19  ;;  %vm4745_vm6 = vmpackc.low %vm1281_vm5, %vm1281_vm5  ;;  %s5155_s0 = sld [smem:[#allocation17_spill]]  ;;  %s5156_s26 = sld [smem:[#allocation23_spill]]  ;;  %vm1369_vm7 = vcmask 130048   ;;  %vm3172_vm10 = vcmask 523264  }
  0x55   : > { %4077 = vmatprep.subr.bf16.mxu1 %v4076_v10  ;;  %v4071_v18 = vpack.c.bf16 %v1020_v17, %v1019_v16  ;;  %v3598_v38 = vld [vmem:[%s4640_s19] ss:$0 sm:$0xff]  ;;  %v3610_v46 = vld [vmem:[%s4625_s16 + $0x28] sm:$0xff]  ;;  %v3611_v52 = vld [vmem:[%s4625_s16 + $0x30] sm:$0xff]  ;;  %s5158_s4 = sld [smem:[#allocation19_spill]]  ;;  %s5159_s8 = sld [smem:[#allocation20_spill]] }
  0x56   : > { %4079 = vmatpush3.bf16.msra.mxu1 %v4076_v10  ;;  %v3609_v45 = vld [vmem:[%s4625_s16 + $0x20] sm:$0xff]  ;;  %v3612_v53 = vld [vmem:[%s4625_s16 + $0x38] sm:$0xff]  ;;  %v1196_v56 = vld [vmem:[%s4645_s30 + $0x8] sm:$0xff]  ;;  %p3704_p2 = scmp.ne.s32.totalorder %s4384_s27, 1 }
  0x57   : > { %4081 = vmatprep.subr.bf16.mxu1 %v4080_v14  ;;  %4072 = vmatpush3.bf16.msra.mxu0 %v4071_v18  ;;  %v4100_v49 = vpack.c.bf16 %v3610_v46, %v3609_v45  ;;  %v4103_v54 = vpack.c.bf16 %v3612_v53, %v3611_v52  ;;  %v1195_v55 = vld [vmem:[%s4645_s30] sm:$0xff]  ;;  %v1197_v57 = vld [vmem:[%s4645_s30 + $0x10] sm:$0xff]  ;;  %v1198_v59 = vld [vmem:[%s4645_s30 + $0x18] sm:$0xff] }
  0x58   : > { %4073 = vmatprep.subr.bf16.mxu0 %v4402_v15  ;;  %s5149_s18 = scalar_lea.vmem %s5148_s11, %s4610_s3  ;;  %v4084_v58 = vpack.c.bf16 %v1196_v56, %v1195_v55  ;;  %v4088_v60 = vpack.c.bf16 %v1198_v59, %v1197_v57  ;;  %v3616_v19 = vld [vmem:[%s4635_s2 + $0x20] sm:$0xff]  ;;  %v3617_v20 = vld [vmem:[%s4635_s2 + $0x28] sm:$0xff] }
  0x59   : > { %v3594_v32 = vld [vmem:[%s5149_s18] ss:$0 sm:$0xff]  ;;  %s5151_s29 = scalar_lea.vmem %s5150_s15, %s4610_s3  ;;  %v3614_v53 = vld [vmem:[%s5152_s20 + $0x1] ss:$0 sm:$0xff] }
  0x5a   : > { %4083 = vmatpush3.bf16.msra.mxu1 %v4080_v14  ;;  %v3595_v35 = vld [vmem:[%s5151_s29] ss:$0 sm:$0xff]  ;;  %s5157_s7 = scalar_lea.vmem %s5156_s26, %s5155_s0  ;;  %s5166_s0 = sld [smem:[#allocation39_spill]] (!%p3704_p2) }
  0x5b   : > { %4092 = vmatprep.subr.bf16.mxu1 %v4402_v15  ;;  %4075 = vmatpush3.bf16.msra.mxu0 %v4074_v23  ;;  %v3596_v47 = vld [vmem:[%s5152_s20] ss:$0 sm:$0xff]  ;;  %v4105_v23 = vpack.c.bf16 %v3617_v20, %v3616_v19 }
  0x5c   : > { %4085 = vmatprep.subr.bf16.mxu0 %v4084_v58  ;;  %v4779_v62 = vld [vmem:[%s5157_s7] ss:$0 sm:$0xff] }
  0x5d   : > { %3852 = vmatmul.mubr.msk.f32.vlgmr.msra.gmra.mrb[0].mxu1 %vm982_vm1, %v4718_v22  ;;  %v3601_v12 = vld [vmem:[%s5158_s4] ss:$0 sm:$0xff] }
  0x5e   : > { %3869 = vmatprep.mubr.msk.f32.mxu1 %vm4403_vm2, %v4404_v21 }
  0xe0   : > { %v985_v3 = vpop.xlane.xlu0 %984 }
  0xe1   : > { %v987_v4 = vmul.f32 0.03125, %v985_v3 }
  0xe3   : > { %v988_v5 = vsub.f32 %v4695_v1, %v987_v4 }
  0xe5   : > { %v989_v6 = vmul.f32 %v988_v5, %v988_v5  ;;  %v1001_v33 = vmul.f32 %v3594_v32, %v988_v5  ;;  %v3619_v32 = vld [vmem:[%s4635_s2 + $0x38] sm:$0xff] }
  0xe7   : > { %v990_v7 = vsel %vm982_vm1, %v989_v6, 0.0 }
  0xe8   : > { %991 = vadd.xlane.f32.xlu0 %v990_v7 }
 0x130   : > { %v3853_v39 = vpop.f32.mrb[0].mxu1 }
 0x131   : > { %v1192_v40 = vadd.f32 %v3853_v39, %v3598_v38  ;;  %v1186_v41 = vpop.f32.mrb[1].mxu1  ;;  %v3629_v39 = vld [vmem:[%s5158_s4 + $0x1] ss:$0 sm:$0xff] }
 0x132   : > { %v1187_v42 = vadd.f32 %v3598_v38, %v1186_v41 }
 0x134   : > { %v4093_v44 = vpack.c.bf16 %v1192_v40, %v1187_v42 }
 0x136   : > { %4095 = vmatpush3.bf16.xpose.msk.msra.mxu1 %vm4745_vm6, %v4093_v44 }
 0x137   : > { %4099 = vmatprep.subr.bf16.mxu1 %v4402_v15 }
 0x175   : > { %v992_v24 = vpop.xlane.xlu0 %991 }
 0x176   : > { %v994_v25 = vmul.f32 0.032258064, %v992_v24  ;;  %v3624_v24 = vld [vmem:[%s4645_s30 + $0x20] sm:$0xff] }
 0x178   : > { %4278 = vrsqrt.f32 %v994_v25  ;;  %vm1004_vm3 = vcmp.eq.f32.partialorder %v994_v25, inf  ;;  %v1007_v28 = vand.u32 2147483648, %v994_v25  ;;  %vm1006_vm4 = vcmp.eq.f32.partialorder %v994_v25, 0.0 }
 0x182   : > { %v4279_v26 = vpop.eup %4278 }
 0x183   : > { %v1003_v27 = vmul.f32 %v4279_v26, %v994_v25  ;;  %v3626_v26 = vld [vmem:[%s4645_s30 + $0x30] sm:$0xff] }
 0x185   : > { %v1005_v29 = vsel %vm1004_vm3, %v994_v25, %v1003_v27  ;;  %v3625_v25 = vld [vmem:[%s4645_s30 + $0x28] sm:$0xff] }
 0x186   : > { %v1008_v30 = vsel %vm1006_vm4, %v1007_v28, %v1005_v29  ;;  %v4113_v27 = vpack.c.bf16 %v3625_v25, %v3624_v24  ;;  %v3627_v28 = vld [vmem:[%s4645_s30 + $0x38] sm:$0xff]  ;;  %v3639_v25 = vld [vmem:[%s4625_s16 + $0x40] sm:$0xff] }
 0x187   : > { %v1009_v31 = vadd.f32 1e-06, %v1008_v30  ;;  %v4117_v29 = vpack.c.bf16 %v3627_v28, %v3626_v26  ;;  %v3640_v26 = vld [vmem:[%s4625_s16 + $0x48] sm:$0xff]  ;;  %v3641_v28 = vld [vmem:[%s4625_s16 + $0x50] sm:$0xff] }
 0x189   : > { %4280 = vrcp.f32 %v1009_v31  ;;  %v3618_v31 = vld [vmem:[%s4635_s2 + $0x30] sm:$0xff] }
 0x193   : > { %v4281_v34 = vpop.eup %4280 }
 0x194   : > { %v1011_v36 = vmul.f32 %v4281_v34, %v1001_v33 }
 0x196   : > { %v4736_v37 = vadd.f32 %v3595_v35, %v1011_v36  ;;  %v4109_v35 = vpack.c.bf16 %v3619_v32, %v3618_v31  ;;  %v1454_v36 = vld [vmem:[%s5159_s8] sm:$0xff] }
 0x198   : > { %3841 = vmatmul.mubr.msk.f32.vlgmr.msra.gmra.mrb[0].mxu0 %vm982_vm1, %v4736_v37 }
 0x199   : > { %3862 = vmatprep.mubr.msk.f32.mxu0 %vm982_vm1, %v4706_v13  ;;  %4087 = vmatpush3.bf16.msra.mxu0 %v4084_v58 }
 0x19a   : > { %4089 = vmatprep.subr.bf16.mxu0 %v4088_v60 }
 0x19d   : > { %4091 = vmatpush3.bf16.msra.mxu0 %v4088_v60 }
 0x19e   : > { %4096 = vmatprep.subr.bf16.mxu0 %v4402_v15 }
 0x1a0   : > { %3863 = vmatmul.mubr.msk.f32.vlgmr.msra.gmra.mrb[2].mxu0 %vm982_vm1, %v4718_v22 }
 0x1a1   : > { %3876 = vmatprep.mubr.msk.f32.mxu0 %vm4403_vm2, %v4404_v21 }
 0x26b   : > { %v1099_v48 = vpop.f32.mrb[0].mxu0 }
 0x26c   : > { %v1100_v50 = vadd.f32 %v3596_v47, %v1099_v48  ;;  %v3842_v51 = vpop.f32.mrb[1].mxu0  ;;  %v3621_v47 = vld [vmem:[%s4640_s19 + $0x1] ss:$0 sm:$0xff] }
 0x26e   : > { %3870 = vmatmul.mubr.msk.f32.vlgmr.msra.gmra.mrb[2].mxu1 %vm1281_vm5, %v1100_v50 }
 0x26f   : > { %4101 = vmatpush3.bf16.msra.mxu1 %v4100_v49  ;;  %3887 = vmatprep.mubr.msk.f32.mxu1 %vm4403_vm2, %v4404_v21 }
 0x270   : > { %4102 = vmatprep.subr.bf16.mxu1 %v4402_v15 }
 0x273   : > { %4104 = vmatpush3.bf16.msra.mxu1 %v4103_v54  ;;  %v3864_v11 = vpop.f32.mrb[2].mxu0 }
 0x274   : > { %v1272_v14 = vpop.f32.mrb[3].mxu0  ;;  %v1278_v16 = vadd.f32 %v3864_v11, %v3601_v12  ;;  %4114 = vmatprep.subr.bf16.mxu1 %v4113_v27 }
 0x275   : > { %v1273_v17 = vadd.f32 %v3601_v12, %v1272_v14 }
 0x276   : > { %3888 = vmatmul.mubr.msk.f32.vlgmr.msra.gmra.mrb[4].mxu1 %vm982_vm1, %v4736_v37 }
 0x277   : > { %3909 = vmatprep.mubr.msk.f32.mxu1 %vm982_vm1, %v4706_v13  ;;  %v4097_v18 = vpack.c.bf16 %v1278_v16, %v1273_v17  ;;  %4116 = vmatpush3.bf16.msra.mxu1 %v4113_v27  ;;  %v3636_v16 = vld [vmem:[%s5159_s8 + $0x8] sm:$0xff]  ;;  %v3651_v17 = vld [vmem:[%s4640_s19 + $0x2] ss:$0 sm:$0xff]  ;;  %v4129_v27 = vpack.c.bf16 %v3640_v26, %v3639_v25 }
 0x278   : > { %4118 = vmatprep.subr.bf16.mxu1 %v4117_v29 }
 0x279   : > { %4098 = vmatpush3.bf16.msra.mxu0 %v4097_v18 }
 0x27a   : > { %4106 = vmatprep.subr.bf16.mxu0 %v4105_v23 }
 0x27b   : > { %4120 = vmatpush3.bf16.msra.mxu1 %v4117_v29  ;;  %v3642_v29 = vld [vmem:[%s4625_s16 + $0x58] sm:$0xff] }
 0x27c   : > { %3931 = vmatprep.subr.mxu1 %v4404_v21  ;;  %v4132_v32 = vpack.c.bf16 %v3642_v29, %v3641_v28 }
 0x27e   : > { %3910 = vmatmul.mubr.msk.f32.vlgmr.msra.gmra.mrb[6].mxu1 %vm982_vm1, %v4718_v22 }
 0x27f   : > { %3933 = vmatprep.mubr.msk.f32.mxu1 %vm4403_vm2, %v4404_v21  ;;  %3932 = vmatpush3.msra.mxu1 %v1454_v36  ;;  %v3644_v36 = vld [vmem:[%s5152_s20 + $0x2] ss:$0 sm:$0xff] }
 0x341   : > { %v1357_v61 = vpop.f32.mrb[2].mxu1 }
 0x342   : > { %v1361_v63 = vmul.f32 0.35355338, %v1357_v61  ;;  %v3871_v0 = vpop.f32.mrb[3].mxu1 }
 0x344   : > { %v1368_v2 = vadd.f32 %v4779_v62, %v1361_v63 }
 0x346   : > { %v1370_v3 = vsel %vm1369_vm7, %v1368_v2, -inf }
 0x347   : > { %1371 = vmax.xlane.f32.xlu1 %v1370_v3 }
 0x349   : > { %v4783_v4 = vpop.f32.mrb[4].mxu1 }
 0x34a   : > { %v3889_v5 = vpop.f32.mrb[5].mxu1  ;;  %v1535_v54 = vadd.f32 %v3614_v53, %v4783_v4 }
 0x34b   : > { %v3646_v5 = vld [vmem:[%s4635_s2 + $0x40] sm:$0xff] }
 0x351   : > { %v3911_v38 = vpop.f32.mrb[6].mxu1 }
 0x352   : > { %v1711_v40 = vadd.f32 %v3911_v38, %v3629_v39  ;;  %v1705_v41 = vpop.f32.mrb[7].mxu1 }
 0x353   : > { %v1706_v42 = vadd.f32 %v3629_v39, %v1705_v41  ;;  %v3654_v41 = vld [vmem:[%s4645_s30 + $0x40] sm:$0xff] }
 0x355   : > { %v4126_v44 = vpack.c.bf16 %v1711_v40, %v1706_v42  ;;  %v3655_v42 = vld [vmem:[%s4645_s30 + $0x48] sm:$0xff] }
 0x3d4   : > { %v1372_v6 = vpop.xlane.xlu1 %1371 }
 0x3d5   : > { %v1373_v7 = vsub.f32 %v1368_v2, %v1372_v6  ;;  %v3647_v6 = vld [vmem:[%s4635_s2 + $0x48] sm:$0xff] }
 0x3d7   : > { %v1374_v8 = vmul.f32 1.442695, %v1373_v7  ;;  %v3648_v7 = vld [vmem:[%s4635_s2 + $0x50] sm:$0xff] }
 0x3d9   : > { %4282 = vpow2.f32 %v1374_v8  ;;  %v4134_v8 = vpack.c.bf16 %v3647_v6, %v3646_v5  ;;  %v3669_v5 = vld [vmem:[%s4625_s16 + $0x68] sm:$0xff] }
 0x3db   : > { %4135 = vmatprep.subr.bf16.mxu1 %v4134_v8 }
 0x3e3   : > { %v4283_v9 = vpop.eup %4282 }
 0x3e4   : > { %v1376_v10 = vsel %vm1369_vm7, %v4283_v9, 0.0 }
 0x3e5   : > { %1377 = vadd.xlane.f32.xlu1 %v1376_v10 }
 0x472   : > { %v1378_v30 = vpop.xlane.xlu1 %1377 }
 0x473   : > { %4284 = vrcp.f32 %v1378_v30 }
 0x47d   : > { %v4285_v33 = vpop.eup %4284 }
 0x47e   : > { %v1380_v34 = vmul.f32 %v4285_v33, %v4283_v9  ;;  %v3649_v9 = vld [vmem:[%s4635_s2 + $0x58] sm:$0xff] }
 0x47f   : > { %v4138_v10 = vpack.c.bf16 %v3649_v9, %v3648_v7  ;;  %v3670_v9 = vld [vmem:[%s4625_s16 + $0x70] sm:$0xff] }
 0x480   : > { %3877 = vmatmul.mubr.msk.f32.vlgmr.msra.gmra.mrb[4].mxu0 %vm1369_vm7, %v1380_v34 }
 0x481   : > { %4108 = vmatpush3.bf16.msra.mxu0 %v4105_v23  ;;  %3898 = vmatprep.mubr.msk.f32.mxu0 %vm982_vm1, %v4706_v13 }
 0x482   : > { %4110 = vmatprep.subr.bf16.mxu0 %v4109_v35 }
 0x485   : > { %4112 = vmatpush3.bf16.msra.mxu0 %v4109_v35 }
 0x486   : > { %4121 = vmatprep.subr.bf16.mxu0 %v4402_v15 }
 0x488   : > { %3899 = vmatmul.mubr.msk.f32.vlgmr.msra.gmra.mrb[6].mxu0 %vm982_vm1, %v4718_v22 }
 0x489   : > { %3916 = vmatprep.mubr.msk.f32.mxu0 %vm4403_vm2, %v4404_v21 }
 0x553   : > { %v1450_v45 = vpop.f32.mrb[4].mxu0 }
 0x554   : > { %v3878_v46 = vpop.f32.mrb[5].mxu0  ;;  %3934 = vmatmul.mubr.msk.f32.vlgmr.msra.gmra.mrb[8].mxu1 %vm1281_vm5, %v1450_v45  ;;  %v4142_v45 = vpack.c.bf16 %v3655_v42, %v3654_v41 }
 0x555   : > { %3955 = vmatprep.mubr.msk.f32.mxu1 %vm982_vm1, %v4706_v13  ;;  %4137 = vmatpush3.bf16.msra.mxu1 %v4134_v8  ;;  %v3657_v46 = vld [vmem:[%s4645_s30 + $0x58] sm:$0xff] }
 0x556   : > { %4139 = vmatprep.subr.bf16.mxu1 %v4138_v10 }
 0x559   : > { %4141 = vmatpush3.bf16.msra.mxu1 %v4138_v10  ;;  %v3671_v10 = vld [vmem:[%s4625_s16 + $0x78] sm:$0xff] }
 0x55a   : > { %4150 = vmatprep.subr.bf16.mxu1 %v4402_v15 }
 0x55b   : > { %v3900_v48 = vpop.f32.mrb[6].mxu0 }
 0x55c   : > { %v1623_v49 = vadd.f32 %v3900_v48, %v3621_v47  ;;  %v1617_v50 = vpop.f32.mrb[7].mxu0  ;;  %3956 = vmatmul.mubr.msk.f32.vlgmr.msra.gmra.mrb[10].mxu1 %vm982_vm1, %v4718_v22 }
 0x55d   : > { %v1618_v51 = vadd.f32 %v3621_v47, %v1617_v50  ;;  %3973 = vmatprep.mubr.msk.f32.mxu1 %vm4403_vm2, %v4404_v21 }
 0x55f   : > { %v4122_v52 = vpack.c.bf16 %v1623_v49, %v1618_v51 }
 0x561   : > { %4124 = vmatpush3.bf16.xpose.msk.msra.mxu0 %vm4745_vm6, %v4122_v52 }
 0x562   : > { %4125 = vmatprep.subr.bf16.mxu0 %v4402_v15 }
 0x568   : > { %3917 = vmatmul.mubr.msk.f32.vlgmr.msra.gmra.mrb[8].mxu0 %vm1281_vm5, %v1535_v54 }
 0x569   : > { %4127 = vmatpush3.bf16.msra.mxu0 %v4126_v44  ;;  %3923 = vmatprep.mubr.msk.f32.mxu0 %vm4403_vm2, %v4404_v21  ;;  %v3656_v44 = vld [vmem:[%s4645_s30 + $0x50] sm:$0xff] }
 0x56a   : > { %3926 = vmatprep.subr.mxu0 %v4404_v21  ;;  %v4146_v47 = vpack.c.bf16 %v3657_v46, %v3656_v44 }
 0x627   : > { %v2023_v55 = vpop.f32.mrb[8].mxu1 }
 0x628   : > { %v3935_v56 = vpop.f32.mrb[9].mxu1 }
 0x62f   : > { %v3957_v18 = vpop.f32.mrb[10].mxu1 }
 0x630   : > { %v2195_v19 = vadd.f32 %v3957_v18, %v3651_v17  ;;  %v2189_v20 = vpop.f32.mrb[11].mxu1  ;;  %v3678_v18 = vld [vmem:[%s4635_s2 + $0x78] sm:$0xff] }
 0x631   : > { %v2190_v23 = vadd.f32 %v3651_v17, %v2189_v20  ;;  %v3677_v17 = vld [vmem:[%s4635_s2 + $0x70] sm:$0xff] }
 0x633   : > { %v4151_v24 = vpack.c.bf16 %v2195_v19, %v2190_v23  ;;  %v4167_v19 = vpack.c.bf16 %v3678_v18, %v3677_v17  ;;  %v3157_v18 = vld [vmem:[%s4683_s24] sm:$0xff] }
 0x635   : > { %4153 = vmatpush3.bf16.xpose.msk.msra.mxu1 %vm4745_vm6, %v4151_v24 }
 0x636   : > { %3983 = vmatprep.subr.mxu1 %v4404_v21 }
 0x63b   : > { %v1789_v57 = vpop.f32.mrb[8].mxu0 }
 0x63c   : > { %v1793_v58 = vmul.f32 0.35355338, %v1789_v57  ;;  %v3918_v59 = vpop.f32.mrb[9].mxu0 }
 0x63d   : > { %v3659_v59 = vld [vmem:[%s5158_s4 + $0x2] ss:$0 sm:$0xff] }
 0x63e   : > { %v1794_v60 = vadd.f32 %v4779_v62, %v1793_v58 }
 0x640   : > { %v1795_v61 = vsel %vm1369_vm7, %v1794_v60, -inf }
 0x641   : > { %1796 = vmax.xlane.f32.xlu0 %v1795_v61 }
 0x6ce   : > { %v1797_v63 = vpop.xlane.xlu0 %1796 }
 0x6cf   : > { %v1798_v0 = vsub.f32 %v1794_v60, %v1797_v63 }
 0x6d1   : > { %v1799_v2 = vmul.f32 1.442695, %v1798_v0 }
 0x6d3   : > { %4286 = vpow2.f32 %v1799_v2  ;;  %v3666_v2 = vld [vmem:[%s5159_s8 + $0x10] sm:$0xff] }
 0x6dd   : > { %v4287_v3 = vpop.eup %4286 }
 0x6de   : > { %v1801_v4 = vsel %vm1369_vm7, %v4287_v3, 0.0 }
 0x6df   : > { %1802 = vadd.xlane.f32.xlu1 %v1801_v4  ;;  %v3668_v4 = vld [vmem:[%s4625_s16 + $0x60] sm:$0xff] }
 0x6e0   : > { %v4158_v7 = vpack.c.bf16 %v3669_v5, %v3668_v4 }
 0x76c   : > { %v1803_v11 = vpop.xlane.xlu1 %1802 }
 0x76d   : > { %4288 = vrcp.f32 %v1803_v11  ;;  %v4161_v11 = vpack.c.bf16 %v3671_v10, %v3670_v9 }
 0x777   : > { %v4289_v12 = vpop.eup %4288 }
 0x778   : > { %v1805_v14 = vmul.f32 %v4289_v12, %v4287_v3  ;;  %v3675_v12 = vld [vmem:[%s4635_s2 + $0x60] sm:$0xff] }
 0x77a   : > { %3924 = vmatmul.mubr.msk.f32.vlgmr.msra.gmra.mrb[10].mxu0 %vm1369_vm7, %v1805_v14  ;;  %v3676_v14 = vld [vmem:[%s4635_s2 + $0x68] sm:$0xff]  ;;  %s5160_s2 = sld [smem:[#allocation33_spill]] }
 0x77b   : > { %3927 = vmatpush3.msra.mxu0 %v3636_v16  ;;  %3928 = vmatprep.mubr.msk.f32.mxu0 %vm4403_vm2, %v4404_v21  ;;  %v4163_v16 = vpack.c.bf16 %v3676_v14, %v3675_v12  ;;  %v3073_v12 = vld [vmem:[%s4673_s10 + $0x8] sm:$0xff] }
 0x77c   : > { %4128 = vmatprep.subr.bf16.mxu0 %v4402_v15 }
 0x84d   : > { %v1875_v30 = vpop.f32.mrb[10].mxu0 }
 0x84e   : > { %v3925_v31 = vpop.f32.mrb[11].mxu0  ;;  %3929 = vmatmul.mubr.msk.f32.vlgmr.msra.gmra.mrb[12].mxu0 %vm1281_vm5, %v1875_v30 }
 0x84f   : > { %4130 = vmatpush3.bf16.msra.mxu0 %v4129_v27  ;;  %3944 = vmatprep.mubr.msk.f32.mxu0 %vm4403_vm2, %v4404_v21  ;;  %v3680_v27 = vld [vmem:[%s4640_s19 + $0x3] ss:$0 sm:$0xff] }
 0x850   : > { %4131 = vmatprep.subr.bf16.mxu0 %v4402_v15 }
 0x853   : > { %4133 = vmatpush3.bf16.msra.mxu0 %v4132_v32 }
 0x854   : > { %4143 = vmatprep.subr.bf16.mxu0 %v4142_v45 }
 0x856   : > { %3945 = vmatmul.mubr.msk.f32.vlgmr.msra.gmra.mrb[14].mxu0 %vm982_vm1, %v4736_v37 }
 0x857   : > { %3966 = vmatprep.mubr.msk.f32.mxu0 %vm982_vm1, %v4706_v13  ;;  %4145 = vmatpush3.bf16.msra.mxu0 %v4142_v45 }
 0x858   : > { %4147 = vmatprep.subr.bf16.mxu0 %v4146_v47 }
 0x85b   : > { %4149 = vmatpush3.bf16.msra.mxu0 %v4146_v47 }
 0x85c   : > { %4154 = vmatprep.subr.bf16.mxu0 %v4402_v15 }
 0x85e   : > { %3967 = vmatmul.mubr.msk.f32.vlgmr.msra.gmra.mrb[16].mxu0 %vm982_vm1, %v4718_v22 }
 0x85f   : > { %3980 = vmatprep.mubr.msk.f32.mxu0 %vm4403_vm2, %v4404_v21 }
 0x921   : > { %v1950_v33 = vpop.f32.mrb[12].mxu0 }
 0x922   : > { %v4856_v34 = vadd.f32 %v2023_v55, %v1950_v33  ;;  %v3930_v35 = vpop.f32.mrb[13].mxu0  ;;  %v3673_v33 = vld [vmem:[%s5152_s20 + $0x3] ss:$0 sm:$0xff] }
 0x929   : > { %v2106_v38 = vpop.f32.mrb[14].mxu0 }
 0x92a   : > { %v2107_v39 = vadd.f32 %v3644_v36, %v2106_v38  ;;  %v3946_v40 = vpop.f32.mrb[15].mxu0  ;;  %v3684_v36 = vld [vmem:[%s4645_s30 + $0x68] sm:$0xff]  ;;  %v3685_v38 = vld [vmem:[%s4645_s30 + $0x70] sm:$0xff] }
 0x92b   : > { %v3686_v40 = vld [vmem:[%s4645_s30 + $0x78] sm:$0xff] }
 0x92c   : > { %3974 = vmatmul.mubr.msk.f32.vlgmr.msra.gmra.mrb[12].mxu1 %vm1281_vm5, %v2107_v39  ;;  %v4175_v41 = vpack.c.bf16 %v3686_v40, %v3685_v38  ;;  %v3699_v38 = vld [vmem:[%s952_s21] ss:$0 sm:$0xff] }
 0x92d   : > { %3985 = vmatprep.mubr.msk.f32.mxu1 %vm4403_vm2, %v4404_v21  ;;  %3984 = vmatpush3.msra.mxu1 %v3666_v2 }
 0x92e   : > { %4164 = vmatprep.subr.bf16.mxu1 %v4163_v16 }
 0x931   : > { %v3968_v58 = vpop.f32.mrb[16].mxu0 }
 0x932   : > { %v2277_v60 = vpop.f32.mrb[17].mxu0  ;;  %v2283_v61 = vadd.f32 %v3968_v58, %v3659_v59 }
 0x933   : > { %v2278_v63 = vadd.f32 %v3659_v59, %v2277_v60 }
 0x935   : > { %v4155_v0 = vpack.c.bf16 %v2283_v61, %v2278_v63 }
 0x937   : > { %4156 = vmatpush3.bf16.msra.mxu0 %v4155_v0 }
 0x938   : > { %4157 = vmatprep.subr.bf16.mxu0 %v4402_v15 }
 0x9ff   : > { %v2361_v48 = vpop.f32.mrb[12].mxu1 }
 0xa00   : > { %v2365_v49 = vmul.f32 0.35355338, %v2361_v48  ;;  %v3975_v50 = vpop.f32.mrb[13].mxu1 }
 0xa02   : > { %v2366_v51 = vadd.f32 %v4779_v62, %v2365_v49 }
 0xa04   : > { %v2367_v52 = vsel %vm1369_vm7, %v2366_v51, -inf }
 0xa05   : > { %2368 = vmax.xlane.f32.xlu0 %v2367_v52  ;;  %v3688_v52 = vld [vmem:[%s5158_s4 + $0x3] ss:$0 sm:$0xff] }
 0xa92   : > { %v2369_v53 = vpop.xlane.xlu0 %2368 }
 0xa93   : > { %v2370_v54 = vsub.f32 %v2366_v51, %v2369_v53 }
 0xa95   : > { %v2371_v55 = vmul.f32 1.442695, %v2370_v54 }
 0xa97   : > { %4290 = vpow2.f32 %v2371_v55 }
 0xaa1   : > { %v4291_v56 = vpop.eup %4290 }
 0xaa2   : > { %v2373_v57 = vsel %vm1369_vm7, %v4291_v56, 0.0 }
 0xaa3   : > { %2374 = vadd.xlane.f32.xlu1 %v2373_v57 }
 0xb30   : > { %v2375_v3 = vpop.xlane.xlu1 %2374 }
 0xb31   : > { %4292 = vrcp.f32 %v2375_v3 }
 0xb3b   : > { %v4293_v6 = vpop.eup %4292 }
 0xb3c   : > { %v2377_v8 = vmul.f32 %v4293_v6, %v4291_v56 }
 0xb3e   : > { %3981 = vmatmul.mubr.msk.f32.vlgmr.msra.gmra.mrb[18].mxu0 %vm1369_vm7, %v2377_v8 }
 0xb3f   : > { %4159 = vmatpush3.bf16.msra.mxu0 %v4158_v7  ;;  %3996 = vmatprep.mubr.msk.f32.mxu0 %vm4403_vm2, %v4404_v21 }
 0xb40   : > { %4160 = vmatprep.subr.bf16.mxu0 %v4402_v15 }
 0xb43   : > { %4162 = vmatpush3.bf16.msra.mxu0 %v4161_v11  ;;  %v3072_v11 = vld [vmem:[%s4673_s10] sm:$0xff] }
 0xb44   : > { %v4187_v14 = vpack.c.bf16 %v3073_v12, %v3072_v11 }
 0xb46   : > { %3997 = vmatmul.mubr.msk.f32.vlgmr.msra.gmra.mrb[20].mxu0 %vm982_vm1, %v4736_v37 }
 0xb47   : > { %4018 = vmatprep.mubr.msk.f32.mxu0 %vm982_vm1, %v4706_v13 }
 0xc11   : > { %v2447_v20 = vpop.f32.mrb[18].mxu0 }
 0xc12   : > { %v3982_v23 = vpop.f32.mrb[19].mxu0  ;;  %3986 = vmatmul.mubr.msk.f32.vlgmr.msra.gmra.mrb[14].mxu1 %vm1281_vm5, %v2447_v20  ;;  %v3159_v20 = vld [vmem:[%s4683_s24 + $0x10] sm:$0xff] }
 0xc13   : > { %4166 = vmatpush3.bf16.msra.mxu1 %v4163_v16  ;;  %4007 = vmatprep.mubr.msk.f32.mxu1 %vm982_vm1, %v4706_v13  ;;  %v3075_v16 = vld [vmem:[%s4673_s10 + $0x18] sm:$0xff] }
 0xc14   : > { %4168 = vmatprep.subr.bf16.mxu1 %v4167_v19 }
 0xc17   : > { %4170 = vmatpush3.bf16.msra.mxu1 %v4167_v19  ;;  %v3158_v19 = vld [vmem:[%s4683_s24 + $0x8] sm:$0xff] }
 0xc18   : > { %4179 = vmatprep.subr.bf16.mxu1 %v4402_v15  ;;  %v4193_v23 = vpack.c.bf16 %v3158_v19, %v3157_v18 }
 0xc19   : > { %v2606_v37 = vpop.f32.mrb[20].mxu0 }
 0xc1a   : > { %v3998_v24 = vpop.f32.mrb[21].mxu0  ;;  %4008 = vmatmul.mubr.msk.f32.vlgmr.msra.gmra.mrb[16].mxu1 %vm982_vm1, %v4718_v22  ;;  %v2607_v35 = vadd.f32 %v3673_v33, %v2606_v37  ;;  %v3160_v37 = vld [vmem:[%s4683_s24 + $0x18] sm:$0xff] }
 0xc1b   : > { %4025 = vmatprep.mubr.msk.f32.mxu1 %vm4403_vm2, %v4404_v21  ;;  %v4196_v24 = vpack.c.bf16 %v3160_v37, %v3159_v20 }
 0xce5   : > { %v2522_v25 = vpop.f32.mrb[14].mxu1 }
 0xce6   : > { %v4902_v26 = vadd.f32 %v2522_v25, %v4856_v34  ;;  %v3987_v13 = vpop.f32.mrb[15].mxu1  ;;  %v3683_v34 = vld [vmem:[%s4645_s30 + $0x60] sm:$0xff]  ;;  %s5161_s30 = scalar_lea.vmem %s5160_s2, %s4610_s3 }
 0xce7   : > { %v4171_v39 = vpack.c.bf16 %v3684_v36, %v3683_v34  ;;  %v3697_v0 = vld [vmem:[%s5161_s30] ss:$0 sm:$0xff] }
 0xce8   : > { %v3161_v25 = vld [vmem:[%s4683_s24 + $0x20] sm:$0xff] }
 0xce9   : > { %4172 = vmatprep.subr.bf16.mxu0 %v4171_v39 }
 0xcea   : > { %4174 = vmatpush3.bf16.msra.mxu0 %v4171_v39 }
 0xceb   : > { %4176 = vmatprep.subr.bf16.mxu0 %v4175_v41 }
 0xced   : > { %v4009_v28 = vpop.f32.mrb[16].mxu1 }
 0xcee   : > { %v2695_v29 = vadd.f32 %v4009_v28, %v3680_v27  ;;  %v2689_v30 = vpop.f32.mrb[17].mxu1  ;;  %4178 = vmatpush3.bf16.msra.mxu0 %v4175_v41  ;;  %v3163_v41 = vld [vmem:[%s4683_s24 + $0x30] sm:$0xff] }
 0xcef   : > { %v2690_v31 = vadd.f32 %v3680_v27, %v2689_v30  ;;  %4183 = vmatprep.subr.bf16.mxu0 %v4402_v15 }
 0xcf1   : > { %v4180_v32 = vpack.c.bf16 %v2695_v29, %v2690_v31  ;;  %4019 = vmatmul.mubr.msk.f32.vlgmr.msra.gmra.mrb[22].mxu0 %vm982_vm1, %v4718_v22 }
 0xcf2   : > { %4032 = vmatprep.mubr.msk.f32.mxu0 %vm4403_vm2, %v4404_v21 }
 0xcf3   : > { %4182 = vmatpush3.bf16.xpose.msk.msra.mxu1 %vm4745_vm6, %v4180_v32 }
 0xcf4   : > { %4035 = vmatprep.subr.mxu1 %v4404_v21 }
 0xcfa   : > { %4026 = vmatmul.mubr.msk.f32.vlgmr.msra.gmra.mrb[18].mxu1 %vm1281_vm5, %v2607_v35 }
 0xcfb   : > { %4037 = vmatprep.mubr.msk.f32.mxu1 %vm4403_vm2, %v4404_v21 }
 0xdc4   : > { %v4020_v51 = vpop.f32.mrb[22].mxu0 }
 0xdc5   : > { %v2777_v53 = vpop.f32.mrb[23].mxu0  ;;  %v2783_v54 = vadd.f32 %v4020_v51, %v3688_v52 }
 0xdc6   : > { %v2778_v55 = vadd.f32 %v3688_v52, %v2777_v53 }
 0xdc8   : > { %v4184_v56 = vpack.c.bf16 %v2783_v54, %v2778_v55 }
 0xdca   : > { %4185 = vmatpush3.bf16.msra.mxu0 %v4184_v56 }
 0xdcb   : > { %4186 = vmatprep.subr.bf16.mxu0 %v4402_v15 }
 0xdcd   : > { %v2861_v43 = vpop.f32.mrb[18].mxu1 }
 0xdce   : > { %v2865_v42 = vmul.f32 0.35355338, %v2861_v43  ;;  %v4027_v44 = vpop.f32.mrb[19].mxu1  ;;  %v3164_v43 = vld [vmem:[%s4683_s24 + $0x38] sm:$0xff] }
 0xdcf   : > { %v3700_v44 = vld [vmem:[%s960_s12] ss:$0 sm:$0xff] }
 0xdd0   : > { %v2866_v45 = vadd.f32 %v4779_v62, %v2865_v42  ;;  %v3695_v62 = vld [vmem:[%s5159_s8 + $0x18] sm:$0xff]  ;;  %v4202_v42 = vpack.c.bf16 %v3164_v43, %v3163_v41 }
 0xdd1   : > { %4036 = vmatpush3.msra.mxu1 %v3695_v62 }
 0xdd2   : > { %v2867_v46 = vsel %vm1369_vm7, %v2866_v45, -inf  ;;  %4192 = vmatprep.subr.bf16.mxu1 %v4402_v15 }
 0xdd3   : > { %2868 = vmax.xlane.f32.xlu0 %v2867_v46 }
 0xe60   : > { %v2869_v47 = vpop.xlane.xlu0 %2868 }
 0xe61   : > { %v2870_v48 = vsub.f32 %v2866_v45, %v2869_v47 }
 0xe63   : > { %v2871_v49 = vmul.f32 1.442695, %v2870_v48 }
 0xe65   : > { %4294 = vpow2.f32 %v2871_v49  ;;  %v3702_v49 = vld [vmem:[%s968_s5] ss:$0 sm:$0xff] }
 0xe6f   : > { %v4295_v50 = vpop.eup %4294 }
 0xe70   : > { %v2873_v22 = vsel %vm1369_vm7, %v4295_v50, 0.0 }
 0xe71   : > { %2874 = vadd.xlane.f32.xlu1 %v2873_v22 }
 0xefe   : > { %v2875_v57 = vpop.xlane.xlu1 %2874 }
 0xeff   : > { %4296 = vrcp.f32 %v2875_v57 }
 0xf09   : > { %v4297_v58 = vpop.eup %4296 }
 0xf0a   : > { %v2877_v59 = vmul.f32 %v4297_v58, %v4295_v50 }
 0xf0c   : > { %4033 = vmatmul.mubr.msk.f32.vlgmr.msra.gmra.mrb[24].mxu0 %vm1369_vm7, %v2877_v59 }
 0xf0d   : > { %4048 = vmatprep.mubr.msk.f32.mxu0 %vm4403_vm2, %v4404_v21  ;;  %4188 = vmatpush3.bf16.msra.mxu0 %v4187_v14 }
 0xf0e   : > { %4189 = vmatprep.subr.bf16.mxu0 %v4402_v15 }
 0xfdf   : > { %v2947_v60 = vpop.f32.mrb[24].mxu0 }
 0xfe0   : > { %v4034_v61 = vpop.f32.mrb[25].mxu0  ;;  %4038 = vmatmul.mubr.msk.f32.vlgmr.msra.gmra.mrb[20].mxu1 %vm1281_vm5, %v2947_v60 }
 0xfe1   : > { %4067 = vmatprep.mubr.msk.f32.mxu1 %vm4403_vm2, %v4404_v21  ;;  %4194 = vmatpush3.bf16.msra.mxu1 %v4193_v23 }
 0xfe2   : > { %4195 = vmatprep.subr.bf16.mxu1 %v4402_v15 }
 0xfe5   : > { %4197 = vmatpush3.bf16.msra.mxu1 %v4196_v24 }
 0xfe6   : > { %4198 = vmatprep.subr.bf16.mxu1 %v4402_v15 }
0x10b3   : > { %v3022_v63 = vpop.f32.mrb[20].mxu1 }
0x10b4   : > { %v3026_v2 = vadd.f32 %v3022_v63, %v4902_v26  ;;  %v4039_v3 = vpop.f32.mrb[21].mxu1  ;;  %v3162_v26 = vld [vmem:[%s4683_s24 + $0x28] sm:$0xff]  ;;  %s5165_s24 = sld [smem:[#allocation38_spill]] (!%p3704_p2) }
0x10b5   : > { %v4199_v13 = vpack.c.bf16 %v3162_v26, %v3161_v25 }
0x10b6   : > { %v3034_v4 = vadd.f32 %v3697_v0, %v3026_v2 }
0x10b7   : > { %4200 = vmatpush3.bf16.msra.mxu1 %v4199_v13 }
0x10b8   : > { %v4941_v5 = vadd.f32 %v3034_v4, %v4695_v1  ;;  %v3074_v1 = vld [vmem:[%s4673_s10 + $0x10] sm:$0xff]  ;;  %4201 = vmatprep.subr.bf16.mxu1 %v4402_v15  ;;  %v3698_v15 = vld [vmem:[%s5162_s6] ss:$0 sm:$0xff] }
0x10b9   : > { %v4190_v17 = vpack.c.bf16 %v3075_v16, %v3074_v1 }
0x10ba   : > { %v3038_v6 = vsel %vm982_vm1, %v4941_v5, 0.0  ;;  %v3705_v4 = vld [vmem:[%s5165_s24] ss:$0 sm:$0xff] (!%p3704_p2) }
0x10bb   : > { %3039 = vadd.xlane.f32.xlu0 %v3038_v6  ;;  %4191 = vmatpush3.bf16.msra.mxu0 %v4190_v17 }
0x10bc   : > { %4203 = vmatpush3.bf16.msra.mxu1 %v4202_v42 }
0x1148   : > { %v3040_v21 = vpop.xlane.xlu0 %3039 }
0x1149   : > { %v3041_v7 = vmul.f32 0.03125, %v3040_v21  ;;  %v3706_v21 = vld [vmem:[%s5166_s0] ss:$0 sm:$0xff] (!%p3704_p2) }
0x114b   : > { %v3042_v8 = vsub.f32 %v4941_v5, %v3041_v7 }
0x114d   : > { %v3043_v9 = vmul.f32 %v3042_v8, %v3042_v8  ;;  %v3054_v34 = vmul.f32 %v3698_v15, %v3042_v8 }
0x114f   : > { %v3044_v10 = vsel %vm982_vm1, %v3043_v9, 0.0 }
0x1150   : > { %3045 = vadd.xlane.f32.xlu1 %v3044_v10 }
0x11dd   : > { %v3046_v27 = vpop.xlane.xlu1 %3045 }
0x11de   : > { %v3047_v28 = vmul.f32 0.032258064, %v3046_v27 }
0x11e0   : > { %4298 = vrsqrt.f32 %v3047_v28  ;;  %vm3057_vm8 = vcmp.eq.f32.partialorder %v3047_v28, inf  ;;  %v3060_v31 = vand.u32 2147483648, %v3047_v28  ;;  %vm3059_vm9 = vcmp.eq.f32.partialorder %v3047_v28, 0.0 }
0x11ea   : > { %v4299_v29 = vpop.eup %4298 }
0x11eb   : > { %v3056_v30 = vmul.f32 %v4299_v29, %v3047_v28 }
0x11ed   : > { %v3058_v32 = vsel %vm3057_vm8, %v3047_v28, %v3056_v30 }
0x11ee   : > { %v3061_v33 = vsel %vm3059_vm9, %v3060_v31, %v3058_v32 }
0x11ef   : > { %v3062_v35 = vadd.f32 1e-06, %v3061_v33 }
0x11f1   : > { %4300 = vrcp.f32 %v3062_v35 }
0x11fb   : > { %v4301_v36 = vpop.eup %4300 }
0x11fc   : > { %v3064_v39 = vmul.f32 %v4301_v36, %v3054_v34 }
0x11fe   : > { %v3071_v40 = vadd.f32 %v3699_v38, %v3064_v39 }
0x1200   : > { %4049 = vmatmul.mubr.msk.f32.vlgmr.msra.gmra.mrb[26].mxu0 %vm982_vm1, %v3071_v40 }
0x12d3   : > { %v3152_v45 = vpop.f32.mrb[26].mxu0 }
0x12d4   : > { %v3153_v46 = vadd.f32 %v3700_v44, %v3152_v45  ;;  %v4050_v47 = vpop.f32.mrb[27].mxu0 }
0x12d6   : > { %v3156_v48 = vmax.f32 %v3153_v46, 0.0 }
0x12d8   : > { %4068 = vmatmul.mubr.msk.f32.vlgmr.msra.gmra.mrb[22].mxu1 %vm3172_vm10, %v3156_v48 }
0x13a8   : > { %3250 = sbr.rel (%p3704_p2) target bundleno = 5367 (0x14f7), region = 112 }
0x13ab   : > { %v3242_v50 = vpop.f32.mrb[22].mxu1 }
0x13ac   : > { %v3243_v22 = vadd.f32 %v3702_v49, %v3242_v50  ;;  %v4069_v51 = vpop.f32.mrb[23].mxu1 }
0x13ae   : > { %v3246_v52 = vadd.f32 %v3243_v22, %v4941_v5 }
0x13b0   : > { %v3253_v53 = vsel %vm982_vm1, %v3246_v52, 0.0 }
0x13b1   : > { %3254 = vadd.xlane.f32.xlu0 %v3253_v53 }
0x143e   : > { %v3255_v54 = vpop.xlane.xlu0 %3254 }
0x143f   : > { %v3256_v55 = vmul.f32 0.03125, %v3255_v54 }
0x1441   : > { %v3257_v56 = vsub.f32 %v3246_v52, %v3256_v55 }
0x1443   : > { %v3258_v62 = vmul.f32 %v3257_v56, %v3257_v56  ;;  %v3269_v5 = vmul.f32 %v3705_v4, %v3257_v56 }
0x1445   : > { %v3259_v57 = vsel %vm982_vm1, %v3258_v62, 0.0 }
0x1446   : > { %3260 = vadd.xlane.f32.xlu0 %v3259_v57 }
0x14d3   : > { %v3261_v58 = vpop.xlane.xlu0 %3260 }
0x14d4   : > { %v3262_v59 = vmul.f32 0.032258064, %v3261_v58 }
0x14d6   : > { %4302 = vrsqrt.f32 %v3262_v59  ;;  %vm3272_vm11 = vcmp.eq.f32.partialorder %v3262_v59, inf  ;;  %v3275_v63 = vand.u32 2147483648, %v3262_v59  ;;  %vm3274_vm12 = vcmp.eq.f32.partialorder %v3262_v59, 0.0 }
0x14e0   : > { %v4303_v60 = vpop.eup %4302 }
0x14e1   : > { %v3271_v61 = vmul.f32 %v4303_v60, %v3262_v59 }
0x14e3   : > { %v3273_v0 = vsel %vm3272_vm11, %v3262_v59, %v3271_v61 }
0x14e4   : > { %v3276_v2 = vsel %vm3274_vm12, %v3275_v63, %v3273_v0 }
0x14e5   : > { %v3277_v3 = vadd.f32 1e-06, %v3276_v2 }
0x14e7   : > { %4304 = vrcp.f32 %v3277_v3 }
0x14f1   : > { %v4305_v6 = vpop.eup %4304 }
0x14f2   : > { %v3279_v7 = vmul.f32 %v4305_v6, %v3269_v5 }
0x14f4   : > { %v3286_v8 = vadd.f32 %v3706_v21, %v3279_v7 }
0x14f6   : > { %3287 = vst.msk [vmem:[%s4690_s1] sm:$0xff] %vm982_vm1, %v3286_v8 }
0x14f7 PF: > { %p3707_p4 = scmp.ge.s32.totalorder %s4384_s27, 1 }
0x14f8   : > { %3292 = vst.msk [vmem:[%s4690_s1] sm:$0xff] (!%p3707_p4), %vm982_vm1, %v3246_v52 }
0x14f9   : > { %3291 = sbr.rel (%p3707_p4) target bundleno = 5376 (0x1500), region = 116 }
0x1500 PF: > { %s5167_s17 = sld [smem:[#allocation8_spill]]  ;;  %s5170_s19 = sld [smem:[#allocation40_spill]] }
0x1501   : > { %s5168_s22 = sld [smem:[#allocation6_spill]]  ;;  %s3307_s2 = sshll.u32 %s4690_s1, 4  ;;  %s3308_s2 = int_to_ptr.vmem [resolvable:$true] %s3307_s2 }
0x1502   : > { %s4306_s27 = scalar_lea.vmem %s3308_s2, 128  ;;  %s4405_s25 = smov [#allocation2]  }
0x1503   : > { %p4307_p5 = scmp.ne.s32.totalorder %s3308_s2, %s4306_s27  ;;  %s4310_s6 = sshll.u32 %s4405_s25, 4  ;;  %s4311_s6 = int_to_ptr.vmem [resolvable:$false] %s4310_s6 }
0x1504   : > { %s4312_s9 = scalar_lea.vmem %s4311_s6, 256  ;;  %p4313_p8 = scmp.lt.s32.totalorder %s3308_s2, %s4311_s6 }
0x1505   : > { %p4308_p6 = pnand %p4307_p5, %p4565_p3  ;;  %p4314_p10 = scmp.lt.s32.totalorder %s4312_s9, %s4306_s27 }
0x1506   : > { %s3709_s7 = sshll.u32 %s5167_s17, 7 }
0x1507   : > { %s5003_s16 = scalar_lea.hbm %s5170_s19, %s3709_s7  ;;  %s5171_s30 = sand.u32 1, %s5168_s22  }
0x1508   : > { %s3294_s10 = scalar_lea.sflag [#allocation3], %s5171_s30  ;;  %p4309_p7 = pneg %p4308_p6 }
0x1509   : > { %p4315_p11 = por %p4314_p10, %p4313_p8 }
0x150b   : > { %p4316_p12 = pnand %p4315_p11, %p4309_p7 }
0x150d   : > { %4319 = shalt.err (!%p4316_p12)
}
0x150e   : > { %s4320_s1 = scalar_lea.hbm %s5003_s16, 128  ;;  %s4324_s28 = scalar_lea.hbm %s5170_s19, 256 }
0x150f   : > { %p4321_p13 = scmp.ne.s32.totalorder %s5003_s16, %s4320_s1  ;;  %p4325_p2 = scmp.lt.u32.totalorder %s5003_s16, %s5170_s19 }
0x1510   : > { %p4326_p4 = scmp.lt.u32.totalorder %s4324_s28, %s4320_s1  ;;  %p4328_p6 = scmp.lt.u32.totalorder %s4320_s1, %s5003_s16 }
0x1511   : > { %p4322_p0 = pnand %p4321_p13, %p4565_p3 }
0x1512   : > { %p4327_p5 = por %p4326_p4, %p4325_p2 }
0x1513   : > { %p4323_p1 = pneg %p4322_p0 }
0x1514   : > { %p4329_p7 = por %p4328_p6, %p4327_p5 }
0x1516   : > { %p4330_p8 = pnand %p4329_p7, %p4323_p1 }
0x1518   : > { %4333 = shalt.err (!%p4330_p8)
}
0x1519   : > { %4204 = dma.vmem_to_hbm [thread:$0]  (%p4565_p3), %s3308_s2, 128, %s5003_s16, %s3294_s10  }
0x151a PF: > { %s5172_s15 = sld [smem:[#allocation11_spill]]  ;;  %s5173_s29 = sld [smem:[#allocation5_spill]] }
0x1520   : > { %p4210_p10 = scmp.ge.s32.totalorder %s5172_s15, 2  ;;  %s3319_s3 = sand.u32 1, %s5173_s29  }
0x1521   : > { %s3320_s24 = scalar_lea.sflag [#allocation3], %s3319_s3 }
0x1522   : > { %p4207_p11 = pnand %p4210_p10, %p4575_p9 }
0x1524   : > { %4367 = dma.done.wait (!%p4207_p11), %s3320_s24, 128  }
0x1525   : > { %4369 = vsyncadd (!%p4207_p11), %s3320_s24, 4294967168  ;;  %s34_s0 = sadd.s32 1, %s5172_s15   ;;  %s5175_s2 = sld [smem:[#allocation6_spill]] }
0x1526   : > { %p31_p12 = scmp.ge.s32.totalorder %s34_s0, 6   ;;  %s5176_s25 = sld [smem:[#allocation7_spill]] }
0x1527   : > { %s5177_s26 = sld [smem:[#allocation16_spill]]  ;;  %s5178_s27 = sld [smem:[#allocation9_spill]] }
0x1528   : > { %s5179_s3 = sld [smem:[#allocation10_spill]]  ;;  %s5180_s28 = sld [smem:[#allocation12_spill]] }
0x1529   : > { %s5181_s29 = sld [smem:[#allocation14_spill]]  ;;  %33 = sbr.rel (!%p31_p12) target bundleno = 26 (0x1a), region = 226 }
0x1530   :  { %3325 = vsyncpa [#allocation3], 1 }
0x1531   :  { %3327 = vsyncpa [#allocation3 + $0x1], 1 }

</bundles_post_ra>
